<compile_context>
chip_gen: v6e
topology: v6e:2x2x1
jax: 0.10.0
libtpu: 0.0.40
codegen_flags: <defaults>
</compile_context>

<pallas_src>
import functools
import math

import jax
import jax.numpy as jnp
import numpy as np
from jax.experimental import pallas as pl
from jax.experimental.pallas import tpu as pltpu


# --------------------------------------------------------------------------------------
# Pallas kernel: one batch-block per grid step
#   fused projections -> RoPE (cos/sin FMA only) -> per-head attention -> out projection
# --------------------------------------------------------------------------------------
def mha_kernel(xq_ref, xk_ref, xv_ref,
               wq_ref, bq_ref, wk_ref, bk_ref, wv_ref, bv_ref,
               cos_ref, sin_ref, wo_ref, bo_ref,
               out_ref, ctx_ref,
               *, n_heads, d_k, block_b, seq_len):
    d_model = n_heads * d_k
    rows = block_b * seq_len

    # (block_b, S, D) -> (block_b*S, D): tall M so the projection matmuls fill the MXU
    # sublanes once per grid step instead of once per batch element.
    xq = xq_ref[...].reshape(rows, d_model)          # bf16
    xk = xk_ref[...].reshape(rows, d_model)
    xv = xv_ref[...].reshape(rows, d_model)

    cos = cos_ref[...]                               # (rows, D); bf16 on v6e/v7x, fp32 on v5
    sin = sin_ref[...]

    # Fused projections (bf16 operands -> fp32 MXU accumulation), one bias add each.
    # wq = [Wq | Wq@R] (head-permuted, 1/sqrt(d_k) folded); wk likewise without scale.
    qf = jnp.dot(xq, wq_ref[...], preferred_element_type=jnp.float32) + bq_ref[...]   # (rows, 2D)
    kf = jnp.dot(xk, wk_ref[...], preferred_element_type=jnp.float32) + bk_ref[...]   # (rows, 2D)
    vp = jnp.dot(xv, wv_ref[...], preferred_element_type=jnp.float32) + bv_ref[...]   # (rows, D)

    # RoPE as a pure FMA: rope(xW+b) = (x@W1+b1)*cos + (x@W2+b2)*sin, with rotate_half
    # folded into W2 = W@R on the host (no roll / concat needed in-kernel).
    rd = cos.dtype
    q = (qf[:, :d_model].astype(rd) * cos +
         qf[:, d_model:].astype(rd) * sin).astype(jnp.bfloat16)
    k = (kf[:, :d_model].astype(rd) * cos +
         kf[:, d_model:].astype(rd) * sin).astype(jnp.bfloat16)
    v = vp.astype(jnp.bfloat16)

    q3 = q.reshape(block_b, seq_len, d_model)
    k3 = k.reshape(block_b, seq_len, d_model)
    v3 = v.reshape(block_b, seq_len, d_model)

    # Per-head attention, batched over the block's batch elements. Head h owns the
    # contiguous columns [h*d_k, (h+1)*d_k) (already in the final merge order) and its
    # context is written straight into the VMEM scratch slab -- no concatenate chain,
    # and each head's fp32 (S, S) score tile is dead before the next head starts.
    for h in range(n_heads):
        lo = h * d_k
        qh = q3[:, :, lo:lo + d_k]
        kh = k3[:, :, lo:lo + d_k]
        vh = v3[:, :, lo:lo + d_k]

        s = jnp.einsum('bqd,bkd->bqk', qh, kh,
                       preferred_element_type=jnp.float32)          # fp32 scores (scale folded)
        m = jnp.max(s, axis=-1, keepdims=True)
        e = jnp.exp(s - m)
        # Reciprocal goes to the (otherwise idle) EUP slot instead of a VALU divide.
        w = e * pl.reciprocal(jnp.sum(e, axis=-1, keepdims=True), approx=True)

        ctx_ref[:, :, lo:lo + d_k] = jnp.einsum(
            'bqk,bkd->bqd', w.astype(jnp.bfloat16), vh,
            preferred_element_type=jnp.float32)

    acc = ctx_ref[...].reshape(rows, d_model).astype(jnp.bfloat16)   # head-major slab
    out = jnp.dot(acc, wo_ref[...], preferred_element_type=jnp.float32) + bo_ref[...]
    out_ref[...] = out.reshape(block_b, seq_len, d_model).astype(out_ref.dtype)


# --------------------------------------------------------------------------------------
# Host-side folding helpers + pallas_call wrapper
# --------------------------------------------------------------------------------------
def rope_tables(seq_len, embed_dim, base=10000.0):
    theta = 1.0 / (base ** (jnp.arange(0, embed_dim, 2, dtype=jnp.float32) / embed_dim))
    seq_idx = jnp.arange(seq_len, dtype=jnp.float32)
    freqs = jnp.einsum('i,j->ij', seq_idx, theta)             # (S, D/2)
    positions = jnp.concatenate([freqs, freqs], axis=-1)      # (S, D)
    return jnp.cos(positions), jnp.sin(positions)


def _head_permutation(d_model, n_heads, d_k):
    # new column  head*d_k + j   pulls from old column  j*n_heads + head
    new_cols = np.arange(d_model)
    return (new_cols % d_k) * n_heads + (new_cols // d_k)


def _rotate_half_matrix(d_model):
    # rotate_half(x) == x @ R with R a signed permutation:
    #   column c < D/2 reads -x[c + D/2]; column c >= D/2 reads +x[c - D/2]
    half = d_model // 2
    R = np.zeros((d_model, d_model), np.float32)
    R[np.arange(half) + half, np.arange(half)] = -1.0
    R[np.arange(half), np.arange(half) + half] = 1.0
    return R


def _pick_block_b(batch, seq):
    """Largest divisor of `batch` with block*seq <= 256 rows (MXU sublane fill on
    v6e/v7x; also covers v5e's 128) that still leaves >= 2 grid steps whenever batch
    allows, so both v7x TensorCores get work."""
    best = 1
    for cand in range(1, batch + 1):
        if batch % cand:
            continue
        if batch >= 2 and batch // cand < 2:
            continue
        if cand * seq <= 256:
            best = cand
    return best


def _device_tunables():
    try:
        kind = jax.devices()[0].device_kind.lower()
    except Exception:
        kind = ""
    is_v5 = "v5" in kind
    is_v7 = "v7" in kind
    # v5e has no bf16 VPU -> keep RoPE tables/math fp32 there; bf16 elsewhere halves
    # the grid-invariant cos/sin VMEM (matters most inside v7x's 64 MiB).
    rope_dtype = jnp.float32 if is_v5 else jnp.bfloat16
    if is_v7:
        vmem_limit = 48 * 1024 * 1024          # 64 MiB physical -> leave headroom
    elif "v5" in kind or "v6" in kind:
        vmem_limit = 100 * 1024 * 1024         # 128 MiB physical
    else:
        vmem_limit = 64 * 1024 * 1024
    return rope_dtype, vmem_limit


def multihead_attention(q, k, v, params, *, n_heads, block_b=None):
    B, S, D = q.shape
    d_k = D // n_heads
    Wq, bq, Wk, bk, Wv, bv, Wo, bo = params

    rope_dtype, vmem_limit = _device_tunables()
    if block_b is None:
        block_b = _pick_block_b(B, S)
    assert B % block_b == 0

    perm = _head_permutation(D, n_heads, d_k)
    R = jnp.asarray(_rotate_half_matrix(D))
    scale = 1.0 / math.sqrt(d_k)

    def fold(W, b, s=1.0):
        # [plain | rotate_half-folded] weights, columns permuted to head-major order,
        # concatenated so the kernel does a single (D, 2D) projection matmul per input.
        W1, b1 = (W * s)[:, perm], (b * s)[:, perm]
        W2, b2 = ((W @ R) * s)[:, perm], ((b @ R) * s)[:, perm]
        return jnp.concatenate([W1, W2], axis=1), jnp.concatenate([b1, b2], axis=1)

    Wqf, bqf = fold(Wq, bq, scale)                 # 1/sqrt(d_k) folded into Q
    Wkf, bkf = fold(Wk, bk)
    Wv_p, bv_p = Wv[:, perm], bv[:, perm]

    cos, sin = rope_tables(S, D)
    cos_p = jnp.tile(cos[:, perm], (block_b, 1)).astype(rope_dtype)   # (block_b*S, D)
    sin_p = jnp.tile(sin[:, perm], (block_b, 1)).astype(rope_dtype)

    bf = jnp.bfloat16
    kernel = functools.partial(mha_kernel, n_heads=n_heads, d_k=d_k,
                               block_b=block_b, seq_len=S)

    args = (
        q.astype(bf), k.astype(bf), v.astype(bf),
        Wqf.astype(bf), bqf, Wkf.astype(bf), bkf, Wv_p.astype(bf), bv_p,
        cos_p, sin_p,
        Wo.astype(bf), bo,
    )

    rope_bytes = 2 if rope_dtype == jnp.bfloat16 else 4
    cost = pl.CostEstimate(
        flops=int(B * (12 * S * D * D + 4 * S * S * D)),
        transcendentals=int(B * n_heads * S * S),
        bytes_accessed=int(4 * B * S * D * 2 + 6 * D * D * 2 + 6 * D * 4 +
                           2 * block_b * S * D * rope_bytes),
    )

    def build(single_buffer_invariants):
        pm = pl.Buffered(1) if single_buffer_invariants else None
        batched = pl.BlockSpec((block_b, S, D), lambda b: (b, 0, 0))

        def invariant(shape):
            zeros = (0,) * len(shape)
            if pm is None:
                return pl.BlockSpec(shape, lambda b: zeros)
            # Grid-invariant operand: single-buffer it instead of the default double
            # buffering (halves its VMEM footprint; matters at realistic D).
            return pl.BlockSpec(shape, lambda b: zeros, pipeline_mode=pm)

        in_specs = [
            batched, batched, batched,                                  # q, k, v (bf16)
            invariant((D, 2 * D)), invariant((1, 2 * D)),               # Wq|WqR, bq|bqR
            invariant((D, 2 * D)), invariant((1, 2 * D)),               # Wk|WkR, bk|bkR
            invariant((D, D)), invariant((1, D)),                       # Wv, bv
            invariant((block_b * S, D)), invariant((block_b * S, D)),   # cos, sin
            invariant((D, D)), invariant((1, D)),                       # Wo, bo
        ]

        return pl.pallas_call(
            kernel,
            out_shape=jax.ShapeDtypeStruct((B, S, D), jnp.bfloat16),
            grid=(B // block_b,),
            in_specs=in_specs,
            out_specs=pl.BlockSpec((block_b, S, D), lambda b: (b, 0, 0)),
            scratch_shapes=[pltpu.VMEM((block_b, S, D), jnp.float32)],  # context slab
            compiler_params=pltpu.CompilerParams(
                dimension_semantics=("parallel",),      # batch blocks shard across TCs
                vmem_limit_bytes=vmem_limit,
            ),
            cost_estimate=cost,
        )

    try:
        out = jax.block_until_ready(build(True)(*args))
    except Exception:
        # pipeline_mode=pl.Buffered(1) not supported by this jax build; fall back to
        # default double-buffered invariant operands (costs VMEM only, not correctness).
        out = build(False)(*args)

    # Kernel stores bf16 (halves HBM writeback); return fp32 to match the module.
    return out.astype(jnp.float32)


# --------------------------------------------------------------------------------------
# Pure-JAX reference (mirrors the PyTorch forward exactly, fp32) and parameter init
# --------------------------------------------------------------------------------------
def mha_reference(q, k, v, params, n_heads, d_k):
    Wq, bq, Wk, bk, Wv, bv, Wo, bo = params
    B, S, D = q.shape
    qp = q @ Wq + bq
    kp = k @ Wk + bk
    vp = v @ Wv + bv
    cos, sin = rope_tables(S, D)

    def rope(x):
        x1, x2 = x[..., :D // 2], x[..., D // 2:]
        return x * cos + jnp.concatenate([-x2, x1], axis=-1) * sin

    qp, kp = rope(qp), rope(kp)

    def split_heads(x):  # 'b c (h w) -> b w c h', h=d_k
        return jnp.transpose(x.reshape(B, S, d_k, n_heads), (0, 3, 1, 2))

    qh, kh, vh = split_heads(qp), split_heads(kp), split_heads(vp)
    scores = jnp.einsum('bhqd,bhkd->bhqk', qh, kh) / math.sqrt(d_k)
    w = jax.nn.softmax(scores, axis=-1)
    ctx = jnp.einsum('bhqk,bhkd->bhqd', w, vh)                           # (B, H, S, d_k)
    out = jnp.transpose(ctx, (0, 2, 1, 3)).reshape(B, S, n_heads * d_k)  # 'b c h w -> b h (c w)'
    return out @ Wo + bo


def init_params(key, d_model):
    keys = jax.random.split(key, 8)
    lim = 1.0 / math.sqrt(d_model)

    def lin(kw, kb):
        W = jax.random.uniform(kw, (d_model, d_model), jnp.float32, -lim, lim)
        b = jax.random.uniform(kb, (1, d_model), jnp.float32, -lim, lim)
        return W, b

    Wq, bq = lin(keys[0], keys[1])
    Wk, bk = lin(keys[2], keys[3])
    Wv, bv = lin(keys[4], keys[5])
    Wo, bo = lin(keys[6], keys[7])
    return (Wq, bq, Wk, bk, Wv, bv, Wo, bo)


if __name__ == "__main__":
    B, S, D, H = 2, 8, 32, 4   # batch, seq, d_model, n_heads  (d_k = 8)

    root = jax.random.PRNGKey(0)
    kq, kk_, kv, kp = jax.random.split(root, 4)
    q = jax.random.normal(kq, (B, S, D), jnp.float32)
    k = jax.random.normal(kk_, (B, S, D), jnp.float32)
    v = jax.random.normal(kv, (B, S, D), jnp.float32)
    params = init_params(kp, D)

    out = multihead_attention(q, k, v, params, n_heads=H)
    out = jax.block_until_ready(out)

    ref = mha_reference(q, k, v, params, H, D // H)
    assert out.shape == (B, S, D)
    err = float(jnp.max(jnp.abs(out - ref)))
    # bf16 MXU operands / bf16 output (fp32 accumulation) vs. the fp32 reference ->
    # slightly looser tolerance than a pure-fp32 kernel would need.
    if not jnp.allclose(out, ref, atol=5e-2, rtol=5e-2):
        raise AssertionError(f"kernel/reference mismatch, max abs err = {err}")

    print("KERNEL_OK")
</pallas_src>

<mosaic_0001>
module attributes {stable_mosaic.version = 11 : i64} {
  func.func @mha_kernel(%arg0: i32, %arg1: memref<1x8x32xbf16, #tpu.memory_space<vmem>>, %arg2: memref<1x8x32xbf16, #tpu.memory_space<vmem>>, %arg3: memref<1x8x32xbf16, #tpu.memory_space<vmem>>, %arg4: memref<32x64xbf16, #tpu.memory_space<vmem>>, %arg5: memref<1x64xf32, #tpu.memory_space<vmem>>, %arg6: memref<32x64xbf16, #tpu.memory_space<vmem>>, %arg7: memref<1x64xf32, #tpu.memory_space<vmem>>, %arg8: memref<32x32xbf16, #tpu.memory_space<vmem>>, %arg9: memref<1x32xf32, #tpu.memory_space<vmem>>, %arg10: memref<8x32xbf16, #tpu.memory_space<vmem>>, %arg11: memref<8x32xbf16, #tpu.memory_space<vmem>>, %arg12: memref<32x32xbf16, #tpu.memory_space<vmem>>, %arg13: memref<1x32xf32, #tpu.memory_space<vmem>>, %arg14: memref<1x8x32xbf16, #tpu.memory_space<vmem>>, %arg15: memref<1x8x32xf32, #tpu.memory_space<vmem>>) attributes {dimension_semantics = [#tpu.dimension_semantics<parallel>], iteration_bounds = array<i64: 2>, scalar_prefetch = 0 : i64, scratch_operands = 1 : i64, tpu.core_type = #tpu.core_type<tc>, window_params = [{transform_indices = @transform_0, window_bounds = array<i64: 1, 8, 32>}, {transform_indices = @transform_1, window_bounds = array<i64: 1, 8, 32>}, {transform_indices = @transform_2, window_bounds = array<i64: 1, 8, 32>}, {pipeline_mode = #tpu.pipeline_mode<synchronous>, transform_indices = @transform_3, window_bounds = array<i64: 32, 64>}, {pipeline_mode = #tpu.pipeline_mode<synchronous>, transform_indices = @transform_4, window_bounds = array<i64: 1, 64>}, {pipeline_mode = #tpu.pipeline_mode<synchronous>, transform_indices = @transform_5, window_bounds = array<i64: 32, 64>}, {pipeline_mode = #tpu.pipeline_mode<synchronous>, transform_indices = @transform_6, window_bounds = array<i64: 1, 64>}, {pipeline_mode = #tpu.pipeline_mode<synchronous>, transform_indices = @transform_7, window_bounds = array<i64: 32, 32>}, {pipeline_mode = #tpu.pipeline_mode<synchronous>, transform_indices = @transform_8, window_bounds = array<i64: 1, 32>}, {pipeline_mode = #tpu.pipeline_mode<synchronous>, transform_indices = @transform_9, window_bounds = array<i64: 8, 32>}, {pipeline_mode = #tpu.pipeline_mode<synchronous>, transform_indices = @transform_10, window_bounds = array<i64: 8, 32>}, {pipeline_mode = #tpu.pipeline_mode<synchronous>, transform_indices = @transform_11, window_bounds = array<i64: 32, 32>}, {pipeline_mode = #tpu.pipeline_mode<synchronous>, transform_indices = @transform_12, window_bounds = array<i64: 1, 32>}, {transform_indices = @transform_13, window_bounds = array<i64: 1, 8, 32>}]} {
    %c0 = arith.constant 0 : index
    %c0_0 = arith.constant 0 : index
    %c0_1 = arith.constant 0 : index
    %0 = vector.load %arg1[%c0, %c0_0, %c0_1] : memref<1x8x32xbf16, #tpu.memory_space<vmem>>, vector<1x8x32xbf16>
    %1 = vector.shape_cast %0 : vector<1x8x32xbf16> to vector<8x32xbf16>
    %c0_2 = arith.constant 0 : index
    %c0_3 = arith.constant 0 : index
    %c0_4 = arith.constant 0 : index
    %2 = vector.load %arg2[%c0_2, %c0_3, %c0_4] : memref<1x8x32xbf16, #tpu.memory_space<vmem>>, vector<1x8x32xbf16>
    %3 = vector.shape_cast %2 : vector<1x8x32xbf16> to vector<8x32xbf16>
    %c0_5 = arith.constant 0 : index
    %c0_6 = arith.constant 0 : index
    %c0_7 = arith.constant 0 : index
    %4 = vector.load %arg3[%c0_5, %c0_6, %c0_7] : memref<1x8x32xbf16, #tpu.memory_space<vmem>>, vector<1x8x32xbf16>
    %5 = vector.shape_cast %4 : vector<1x8x32xbf16> to vector<8x32xbf16>
    %c0_8 = arith.constant 0 : index
    %c0_9 = arith.constant 0 : index
    %6 = vector.load %arg10[%c0_8, %c0_9] : memref<8x32xbf16, #tpu.memory_space<vmem>>, vector<8x32xbf16>
    %c0_10 = arith.constant 0 : index
    %c0_11 = arith.constant 0 : index
    %7 = vector.load %arg11[%c0_10, %c0_11] : memref<8x32xbf16, #tpu.memory_space<vmem>>, vector<8x32xbf16>
    %c0_12 = arith.constant 0 : index
    %c0_13 = arith.constant 0 : index
    %8 = vector.load %arg4[%c0_12, %c0_13] : memref<32x64xbf16, #tpu.memory_space<vmem>>, vector<32x64xbf16>
    %cst = arith.constant dense<0.000000e+00> : vector<8x64xf32>
    %9 = tpu.matmul %1, %8, %cst {dimension_numbers = #tpu.dot_dimension_numbers<[1], [0], [0], [1], [0, 0, 1, 1], [], []>} : vector<8x32xbf16>, vector<32x64xbf16>, vector<8x64xf32> -> vector<8x64xf32>
    %c0_14 = arith.constant 0 : index
    %c0_15 = arith.constant 0 : index
    %10 = vector.load %arg5[%c0_14, %c0_15] : memref<1x64xf32, #tpu.memory_space<vmem>>, vector<1x64xf32>
    %11 = vector.broadcast %10 : vector<1x64xf32> to vector<8x64xf32>
    %12 = arith.addf %9, %11 : vector<8x64xf32>
    %c0_16 = arith.constant 0 : index
    %c0_17 = arith.constant 0 : index
    %13 = vector.load %arg6[%c0_16, %c0_17] : memref<32x64xbf16, #tpu.memory_space<vmem>>, vector<32x64xbf16>
    %cst_18 = arith.constant dense<0.000000e+00> : vector<8x64xf32>
    %14 = tpu.matmul %3, %13, %cst_18 {dimension_numbers = #tpu.dot_dimension_numbers<[1], [0], [0], [1], [0, 0, 1, 1], [], []>} : vector<8x32xbf16>, vector<32x64xbf16>, vector<8x64xf32> -> vector<8x64xf32>
    %c0_19 = arith.constant 0 : index
    %c0_20 = arith.constant 0 : index
    %15 = vector.load %arg7[%c0_19, %c0_20] : memref<1x64xf32, #tpu.memory_space<vmem>>, vector<1x64xf32>
    %16 = vector.broadcast %15 : vector<1x64xf32> to vector<8x64xf32>
    %17 = arith.addf %14, %16 : vector<8x64xf32>
    %c0_21 = arith.constant 0 : index
    %c0_22 = arith.constant 0 : index
    %18 = vector.load %arg8[%c0_21, %c0_22] : memref<32x32xbf16, #tpu.memory_space<vmem>>, vector<32x32xbf16>
    %cst_23 = arith.constant dense<0.000000e+00> : vector<8x32xf32>
    %19 = tpu.matmul %5, %18, %cst_23 {dimension_numbers = #tpu.dot_dimension_numbers<[1], [0], [0], [1], [0, 0, 1, 1], [], []>} : vector<8x32xbf16>, vector<32x32xbf16>, vector<8x32xf32> -> vector<8x32xf32>
    %c0_24 = arith.constant 0 : index
    %c0_25 = arith.constant 0 : index
    %20 = vector.load %arg9[%c0_24, %c0_25] : memref<1x32xf32, #tpu.memory_space<vmem>>, vector<1x32xf32>
    %21 = vector.broadcast %20 : vector<1x32xf32> to vector<8x32xf32>
    %22 = arith.addf %19, %21 : vector<8x32xf32>
    %23 = vector.extract_strided_slice %12 {offsets = [0, 0], sizes = [8, 32], strides = [1, 1]} : vector<8x64xf32> to vector<8x32xf32>
    %24 = arith.truncf %23 : vector<8x32xf32> to vector<8x32xbf16>
    %25 = arith.mulf %24, %6 : vector<8x32xbf16>
    %26 = vector.extract_strided_slice %12 {offsets = [0, 32], sizes = [8, 32], strides = [1, 1]} : vector<8x64xf32> to vector<8x32xf32>
    %27 = arith.truncf %26 : vector<8x32xf32> to vector<8x32xbf16>
    %28 = arith.mulf %27, %7 : vector<8x32xbf16>
    %29 = arith.addf %25, %28 : vector<8x32xbf16>
    %30 = vector.extract_strided_slice %17 {offsets = [0, 0], sizes = [8, 32], strides = [1, 1]} : vector<8x64xf32> to vector<8x32xf32>
    %31 = arith.truncf %30 : vector<8x32xf32> to vector<8x32xbf16>
    %32 = arith.mulf %31, %6 : vector<8x32xbf16>
    %33 = vector.extract_strided_slice %17 {offsets = [0, 32], sizes = [8, 32], strides = [1, 1]} : vector<8x64xf32> to vector<8x32xf32>
    %34 = arith.truncf %33 : vector<8x32xf32> to vector<8x32xbf16>
    %35 = arith.mulf %34, %7 : vector<8x32xbf16>
    %36 = arith.addf %32, %35 : vector<8x32xbf16>
    %37 = arith.truncf %22 : vector<8x32xf32> to vector<8x32xbf16>
    %38 = vector.shape_cast %29 : vector<8x32xbf16> to vector<1x8x32xbf16>
    %39 = vector.shape_cast %36 : vector<8x32xbf16> to vector<1x8x32xbf16>
    %40 = vector.shape_cast %37 : vector<8x32xbf16> to vector<1x8x32xbf16>
    %41 = vector.extract_strided_slice %38 {offsets = [0, 0, 0], sizes = [1, 8, 8], strides = [1, 1, 1]} : vector<1x8x32xbf16> to vector<1x8x8xbf16>
    %42 = vector.extract_strided_slice %39 {offsets = [0, 0, 0], sizes = [1, 8, 8], strides = [1, 1, 1]} : vector<1x8x32xbf16> to vector<1x8x8xbf16>
    %43 = vector.extract_strided_slice %40 {offsets = [0, 0, 0], sizes = [1, 8, 8], strides = [1, 1, 1]} : vector<1x8x32xbf16> to vector<1x8x8xbf16>
    "tpu.trace_start"() <{level = 10 : i32, message = "bqd,bkd->bqk"}> : () -> ()
    %cst_26 = arith.constant dense<0.000000e+00> : vector<1x8x8xf32>
    %44 = tpu.matmul %41, %42, %cst_26 {dimension_numbers = #tpu.dot_dimension_numbers<[2], [2], [1], [1], [0, 0, 0, 1, 1, 1], [0], [0]>} : vector<1x8x8xbf16>, vector<1x8x8xbf16>, vector<1x8x8xf32> -> vector<1x8x8xf32>
    "tpu.trace_stop"() : () -> ()
    %cst_27 = arith.constant dense<0xFF800000> : vector<1x8xf32>
    %45 = vector.multi_reduction <maximumf>, %44, %cst_27 [2] : vector<1x8x8xf32> to vector<1x8xf32>
    %46 = vector.shape_cast %45 : vector<1x8xf32> to vector<1x8x1xf32>
    %47 = vector.broadcast %46 : vector<1x8x1xf32> to vector<1x8x8xf32>
    %48 = arith.subf %44, %47 : vector<1x8x8xf32>
    %49 = math.exp %48 : vector<1x8x8xf32>
    %cst_28 = arith.constant dense<0.000000e+00> : vector<1x8xf32>
    %50 = vector.multi_reduction <add>, %49, %cst_28 [2] : vector<1x8x8xf32> to vector<1x8xf32>
    %51 = vector.shape_cast %50 : vector<1x8xf32> to vector<1x8x1xf32>
    %52 = tpu.reciprocal %51 {approx = true} : vector<1x8x1xf32> -> vector<1x8x1xf32>
    %53 = vector.broadcast %52 : vector<1x8x1xf32> to vector<1x8x8xf32>
    %54 = arith.mulf %49, %53 : vector<1x8x8xf32>
    %55 = arith.truncf %54 : vector<1x8x8xf32> to vector<1x8x8xbf16>
    "tpu.trace_start"() <{level = 10 : i32, message = "bqk,bkd->bqd"}> : () -> ()
    %cst_29 = arith.constant dense<0.000000e+00> : vector<1x8x8xf32>
    %56 = tpu.matmul %55, %43, %cst_29 {dimension_numbers = #tpu.dot_dimension_numbers<[2], [1], [1], [2], [0, 0, 0, 1, 1, 2], [0], [0]>} : vector<1x8x8xbf16>, vector<1x8x8xbf16>, vector<1x8x8xf32> -> vector<1x8x8xf32>
    "tpu.trace_stop"() : () -> ()
    %c0_30 = arith.constant 0 : index
    %c0_31 = arith.constant 0 : index
    %c0_32 = arith.constant 0 : index
    %57 = vector.load %arg15[%c0_30, %c0_31, %c0_32] : memref<1x8x32xf32, #tpu.memory_space<vmem>>, vector<1x8x8xf32>
    tpu.vector_store %arg15[%c0_30, %c0_31, %c0_32], %56 {strides = array<i32>} : memref<1x8x32xf32, #tpu.memory_space<vmem>>, vector<1x8x8xf32>,
    %58 = vector.extract_strided_slice %38 {offsets = [0, 0, 8], sizes = [1, 8, 8], strides = [1, 1, 1]} : vector<1x8x32xbf16> to vector<1x8x8xbf16>
    %59 = vector.extract_strided_slice %39 {offsets = [0, 0, 8], sizes = [1, 8, 8], strides = [1, 1, 1]} : vector<1x8x32xbf16> to vector<1x8x8xbf16>
    %60 = vector.extract_strided_slice %40 {offsets = [0, 0, 8], sizes = [1, 8, 8], strides = [1, 1, 1]} : vector<1x8x32xbf16> to vector<1x8x8xbf16>
    "tpu.trace_start"() <{level = 10 : i32, message = "bqd,bkd->bqk"}> : () -> ()
    %cst_33 = arith.constant dense<0.000000e+00> : vector<1x8x8xf32>
    %61 = tpu.matmul %58, %59, %cst_33 {dimension_numbers = #tpu.dot_dimension_numbers<[2], [2], [1], [1], [0, 0, 0, 1, 1, 1], [0], [0]>} : vector<1x8x8xbf16>, vector<1x8x8xbf16>, vector<1x8x8xf32> -> vector<1x8x8xf32>
    "tpu.trace_stop"() : () -> ()
    %cst_34 = arith.constant dense<0xFF800000> : vector<1x8xf32>
    %62 = vector.multi_reduction <maximumf>, %61, %cst_34 [2] : vector<1x8x8xf32> to vector<1x8xf32>
    %63 = vector.shape_cast %62 : vector<1x8xf32> to vector<1x8x1xf32>
    %64 = vector.broadcast %63 : vector<1x8x1xf32> to vector<1x8x8xf32>
    %65 = arith.subf %61, %64 : vector<1x8x8xf32>
    %66 = math.exp %65 : vector<1x8x8xf32>
    %cst_35 = arith.constant dense<0.000000e+00> : vector<1x8xf32>
    %67 = vector.multi_reduction <add>, %66, %cst_35 [2] : vector<1x8x8xf32> to vector<1x8xf32>
    %68 = vector.shape_cast %67 : vector<1x8xf32> to vector<1x8x1xf32>
    %69 = tpu.reciprocal %68 {approx = true} : vector<1x8x1xf32> -> vector<1x8x1xf32>
    %70 = vector.broadcast %69 : vector<1x8x1xf32> to vector<1x8x8xf32>
    %71 = arith.mulf %66, %70 : vector<1x8x8xf32>
    %72 = arith.truncf %71 : vector<1x8x8xf32> to vector<1x8x8xbf16>
    "tpu.trace_start"() <{level = 10 : i32, message = "bqk,bkd->bqd"}> : () -> ()
    %cst_36 = arith.constant dense<0.000000e+00> : vector<1x8x8xf32>
    %73 = tpu.matmul %72, %60, %cst_36 {dimension_numbers = #tpu.dot_dimension_numbers<[2], [1], [1], [2], [0, 0, 0, 1, 1, 2], [0], [0]>} : vector<1x8x8xbf16>, vector<1x8x8xbf16>, vector<1x8x8xf32> -> vector<1x8x8xf32>
    "tpu.trace_stop"() : () -> ()
    %c0_37 = arith.constant 0 : index
    %c0_38 = arith.constant 0 : index
    %c8 = arith.constant 8 : index
    %74 = vector.load %arg15[%c0_37, %c0_38, %c8] : memref<1x8x32xf32, #tpu.memory_space<vmem>>, vector<1x8x8xf32>
    tpu.vector_store %arg15[%c0_37, %c0_38, %c8], %73 {strides = array<i32>} : memref<1x8x32xf32, #tpu.memory_space<vmem>>, vector<1x8x8xf32>,
    %75 = vector.extract_strided_slice %38 {offsets = [0, 0, 16], sizes = [1, 8, 8], strides = [1, 1, 1]} : vector<1x8x32xbf16> to vector<1x8x8xbf16>
    %76 = vector.extract_strided_slice %39 {offsets = [0, 0, 16], sizes = [1, 8, 8], strides = [1, 1, 1]} : vector<1x8x32xbf16> to vector<1x8x8xbf16>
    %77 = vector.extract_strided_slice %40 {offsets = [0, 0, 16], sizes = [1, 8, 8], strides = [1, 1, 1]} : vector<1x8x32xbf16> to vector<1x8x8xbf16>
    "tpu.trace_start"() <{level = 10 : i32, message = "bqd,bkd->bqk"}> : () -> ()
    %cst_39 = arith.constant dense<0.000000e+00> : vector<1x8x8xf32>
    %78 = tpu.matmul %75, %76, %cst_39 {dimension_numbers = #tpu.dot_dimension_numbers<[2], [2], [1], [1], [0, 0, 0, 1, 1, 1], [0], [0]>} : vector<1x8x8xbf16>, vector<1x8x8xbf16>, vector<1x8x8xf32> -> vector<1x8x8xf32>
    "tpu.trace_stop"() : () -> ()
    %cst_40 = arith.constant dense<0xFF800000> : vector<1x8xf32>
    %79 = vector.multi_reduction <maximumf>, %78, %cst_40 [2] : vector<1x8x8xf32> to vector<1x8xf32>
    %80 = vector.shape_cast %79 : vector<1x8xf32> to vector<1x8x1xf32>
    %81 = vector.broadcast %80 : vector<1x8x1xf32> to vector<1x8x8xf32>
    %82 = arith.subf %78, %81 : vector<1x8x8xf32>
    %83 = math.exp %82 : vector<1x8x8xf32>
    %cst_41 = arith.constant dense<0.000000e+00> : vector<1x8xf32>
    %84 = vector.multi_reduction <add>, %83, %cst_41 [2] : vector<1x8x8xf32> to vector<1x8xf32>
    %85 = vector.shape_cast %84 : vector<1x8xf32> to vector<1x8x1xf32>
    %86 = tpu.reciprocal %85 {approx = true} : vector<1x8x1xf32> -> vector<1x8x1xf32>
    %87 = vector.broadcast %86 : vector<1x8x1xf32> to vector<1x8x8xf32>
    %88 = arith.mulf %83, %87 : vector<1x8x8xf32>
    %89 = arith.truncf %88 : vector<1x8x8xf32> to vector<1x8x8xbf16>
    "tpu.trace_start"() <{level = 10 : i32, message = "bqk,bkd->bqd"}> : () -> ()
    %cst_42 = arith.constant dense<0.000000e+00> : vector<1x8x8xf32>
    %90 = tpu.matmul %89, %77, %cst_42 {dimension_numbers = #tpu.dot_dimension_numbers<[2], [1], [1], [2], [0, 0, 0, 1, 1, 2], [0], [0]>} : vector<1x8x8xbf16>, vector<1x8x8xbf16>, vector<1x8x8xf32> -> vector<1x8x8xf32>
    "tpu.trace_stop"() : () -> ()
    %c0_43 = arith.constant 0 : index
    %c0_44 = arith.constant 0 : index
    %c16 = arith.constant 16 : index
    %91 = vector.load %arg15[%c0_43, %c0_44, %c16] : memref<1x8x32xf32, #tpu.memory_space<vmem>>, vector<1x8x8xf32>
    tpu.vector_store %arg15[%c0_43, %c0_44, %c16], %90 {strides = array<i32>} : memref<1x8x32xf32, #tpu.memory_space<vmem>>, vector<1x8x8xf32>,
    %92 = vector.extract_strided_slice %38 {offsets = [0, 0, 24], sizes = [1, 8, 8], strides = [1, 1, 1]} : vector<1x8x32xbf16> to vector<1x8x8xbf16>
    %93 = vector.extract_strided_slice %39 {offsets = [0, 0, 24], sizes = [1, 8, 8], strides = [1, 1, 1]} : vector<1x8x32xbf16> to vector<1x8x8xbf16>
    %94 = vector.extract_strided_slice %40 {offsets = [0, 0, 24], sizes = [1, 8, 8], strides = [1, 1, 1]} : vector<1x8x32xbf16> to vector<1x8x8xbf16>
    "tpu.trace_start"() <{level = 10 : i32, message = "bqd,bkd->bqk"}> : () -> ()
    %cst_45 = arith.constant dense<0.000000e+00> : vector<1x8x8xf32>
    %95 = tpu.matmul %92, %93, %cst_45 {dimension_numbers = #tpu.dot_dimension_numbers<[2], [2], [1], [1], [0, 0, 0, 1, 1, 1], [0], [0]>} : vector<1x8x8xbf16>, vector<1x8x8xbf16>, vector<1x8x8xf32> -> vector<1x8x8xf32>
    "tpu.trace_stop"() : () -> ()
    %cst_46 = arith.constant dense<0xFF800000> : vector<1x8xf32>
    %96 = vector.multi_reduction <maximumf>, %95, %cst_46 [2] : vector<1x8x8xf32> to vector<1x8xf32>
    %97 = vector.shape_cast %96 : vector<1x8xf32> to vector<1x8x1xf32>
    %98 = vector.broadcast %97 : vector<1x8x1xf32> to vector<1x8x8xf32>
    %99 = arith.subf %95, %98 : vector<1x8x8xf32>
    %100 = math.exp %99 : vector<1x8x8xf32>
    %cst_47 = arith.constant dense<0.000000e+00> : vector<1x8xf32>
    %101 = vector.multi_reduction <add>, %100, %cst_47 [2] : vector<1x8x8xf32> to vector<1x8xf32>
    %102 = vector.shape_cast %101 : vector<1x8xf32> to vector<1x8x1xf32>
    %103 = tpu.reciprocal %102 {approx = true} : vector<1x8x1xf32> -> vector<1x8x1xf32>
    %104 = vector.broadcast %103 : vector<1x8x1xf32> to vector<1x8x8xf32>
    %105 = arith.mulf %100, %104 : vector<1x8x8xf32>
    %106 = arith.truncf %105 : vector<1x8x8xf32> to vector<1x8x8xbf16>
    "tpu.trace_start"() <{level = 10 : i32, message = "bqk,bkd->bqd"}> : () -> ()
    %cst_48 = arith.constant dense<0.000000e+00> : vector<1x8x8xf32>
    %107 = tpu.matmul %106, %94, %cst_48 {dimension_numbers = #tpu.dot_dimension_numbers<[2], [1], [1], [2], [0, 0, 0, 1, 1, 2], [0], [0]>} : vector<1x8x8xbf16>, vector<1x8x8xbf16>, vector<1x8x8xf32> -> vector<1x8x8xf32>
    "tpu.trace_stop"() : () -> ()
    %c0_49 = arith.constant 0 : index
    %c0_50 = arith.constant 0 : index
    %c24 = arith.constant 24 : index
    %108 = vector.load %arg15[%c0_49, %c0_50, %c24] : memref<1x8x32xf32, #tpu.memory_space<vmem>>, vector<1x8x8xf32>
    tpu.vector_store %arg15[%c0_49, %c0_50, %c24], %107 {strides = array<i32>} : memref<1x8x32xf32, #tpu.memory_space<vmem>>, vector<1x8x8xf32>,
    %c0_51 = arith.constant 0 : index
    %c0_52 = arith.constant 0 : index
    %c0_53 = arith.constant 0 : index
    %109 = vector.load %arg15[%c0_51, %c0_52, %c0_53] : memref<1x8x32xf32, #tpu.memory_space<vmem>>, vector<1x8x32xf32>
    %110 = vector.shape_cast %109 : vector<1x8x32xf32> to vector<8x32xf32>
    %111 = arith.truncf %110 : vector<8x32xf32> to vector<8x32xbf16>
    %c0_54 = arith.constant 0 : index
    %c0_55 = arith.constant 0 : index
    %112 = vector.load %arg12[%c0_54, %c0_55] : memref<32x32xbf16, #tpu.memory_space<vmem>>, vector<32x32xbf16>
    %cst_56 = arith.constant dense<0.000000e+00> : vector<8x32xf32>
    %113 = tpu.matmul %111, %112, %cst_56 {dimension_numbers = #tpu.dot_dimension_numbers<[1], [0], [0], [1], [0, 0, 1, 1], [], []>} : vector<8x32xbf16>, vector<32x32xbf16>, vector<8x32xf32> -> vector<8x32xf32>
    %c0_57 = arith.constant 0 : index
    %c0_58 = arith.constant 0 : index
    %114 = vector.load %arg13[%c0_57, %c0_58] : memref<1x32xf32, #tpu.memory_space<vmem>>, vector<1x32xf32>
    %115 = vector.broadcast %114 : vector<1x32xf32> to vector<8x32xf32>
    %116 = arith.addf %113, %115 : vector<8x32xf32>
    %117 = vector.shape_cast %116 : vector<8x32xf32> to vector<1x8x32xf32>
    %118 = arith.truncf %117 : vector<1x8x32xf32> to vector<1x8x32xbf16>
    %c0_59 = arith.constant 0 : index
    %c0_60 = arith.constant 0 : index
    %c0_61 = arith.constant 0 : index
    %119 = vector.load %arg14[%c0_59, %c0_60, %c0_61] : memref<1x8x32xbf16, #tpu.memory_space<vmem>>, vector<1x8x32xbf16>
    tpu.vector_store %arg14[%c0_59, %c0_60, %c0_61], %118 {strides = array<i32>} : memref<1x8x32xbf16, #tpu.memory_space<vmem>>, vector<1x8x32xbf16>,
    return
  }
  func.func @transform_0(%arg0: i32) -> (i32, i32, i32) {
    %c0_i32 = arith.constant 0 : i32
    %c0_i32_0 = arith.constant 0 : i32
    %c0_i32_1 = arith.constant 0 : i32
    return %arg0, %c0_i32, %c0_i32_0 : i32, i32, i32
  }
  func.func @transform_1(%arg0: i32) -> (i32, i32, i32) {
    %c0_i32 = arith.constant 0 : i32
    %c0_i32_0 = arith.constant 0 : i32
    %c0_i32_1 = arith.constant 0 : i32
    return %arg0, %c0_i32, %c0_i32_0 : i32, i32, i32
  }
  func.func @transform_2(%arg0: i32) -> (i32, i32, i32) {
    %c0_i32 = arith.constant 0 : i32
    %c0_i32_0 = arith.constant 0 : i32
    %c0_i32_1 = arith.constant 0 : i32
    return %arg0, %c0_i32, %c0_i32_0 : i32, i32, i32
  }
  func.func @transform_3(%arg0: i32) -> (i32, i32) {
    %c0_i32 = arith.constant 0 : i32
    %c0_i32_0 = arith.constant 0 : i32
    %c0_i32_1 = arith.constant 0 : i32
    return %c0_i32, %c0_i32_0 : i32, i32
  }
  func.func @transform_4(%arg0: i32) -> (i32, i32) {
    %c0_i32 = arith.constant 0 : i32
    %c0_i32_0 = arith.constant 0 : i32
    %c0_i32_1 = arith.constant 0 : i32
    return %c0_i32, %c0_i32_0 : i32, i32
  }
  func.func @transform_5(%arg0: i32) -> (i32, i32) {
    %c0_i32 = arith.constant 0 : i32
    %c0_i32_0 = arith.constant 0 : i32
    %c0_i32_1 = arith.constant 0 : i32
    return %c0_i32, %c0_i32_0 : i32, i32
  }
  func.func @transform_6(%arg0: i32) -> (i32, i32) {
    %c0_i32 = arith.constant 0 : i32
    %c0_i32_0 = arith.constant 0 : i32
    %c0_i32_1 = arith.constant 0 : i32
    return %c0_i32, %c0_i32_0 : i32, i32
  }
  func.func @transform_7(%arg0: i32) -> (i32, i32) {
    %c0_i32 = arith.constant 0 : i32
    %c0_i32_0 = arith.constant 0 : i32
    %c0_i32_1 = arith.constant 0 : i32
    return %c0_i32, %c0_i32_0 : i32, i32
  }
  func.func @transform_8(%arg0: i32) -> (i32, i32) {
    %c0_i32 = arith.constant 0 : i32
    %c0_i32_0 = arith.constant 0 : i32
    %c0_i32_1 = arith.constant 0 : i32
    return %c0_i32, %c0_i32_0 : i32, i32
  }
  func.func @transform_9(%arg0: i32) -> (i32, i32) {
    %c0_i32 = arith.constant 0 : i32
    %c0_i32_0 = arith.constant 0 : i32
    %c0_i32_1 = arith.constant 0 : i32
    return %c0_i32, %c0_i32_0 : i32, i32
  }
  func.func @transform_10(%arg0: i32) -> (i32, i32) {
    %c0_i32 = arith.constant 0 : i32
    %c0_i32_0 = arith.constant 0 : i32
    %c0_i32_1 = arith.constant 0 : i32
    return %c0_i32, %c0_i32_0 : i32, i32
  }
  func.func @transform_11(%arg0: i32) -> (i32, i32) {
    %c0_i32 = arith.constant 0 : i32
    %c0_i32_0 = arith.constant 0 : i32
    %c0_i32_1 = arith.constant 0 : i32
    return %c0_i32, %c0_i32_0 : i32, i32
  }
  func.func @transform_12(%arg0: i32) -> (i32, i32) {
    %c0_i32 = arith.constant 0 : i32
    %c0_i32_0 = arith.constant 0 : i32
    %c0_i32_1 = arith.constant 0 : i32
    return %c0_i32, %c0_i32_0 : i32, i32
  }
  func.func @transform_13(%arg0: i32) -> (i32, i32, i32) {
    %c0_i32 = arith.constant 0 : i32
    %c0_i32_0 = arith.constant 0 : i32
    %c0_i32_1 = arith.constant 0 : i32
    return %arg0, %c0_i32, %c0_i32_0 : i32, i32, i32
  }
}

module attributes {stable_mosaic.version = 11 : i64} {
  func.func @mha_kernel(%arg0: i32, %arg1: memref<1x8x32xbf16, #tpu.memory_space<vmem>>, %arg2: memref<1x8x32xbf16, #tpu.memory_space<vmem>>, %arg3: memref<1x8x32xbf16, #tpu.memory_space<vmem>>, %arg4: memref<32x64xbf16, #tpu.memory_space<vmem>>, %arg5: memref<1x64xf32, #tpu.memory_space<vmem>>, %arg6: memref<32x64xbf16, #tpu.memory_space<vmem>>, %arg7: memref<1x64xf32, #tpu.memory_space<vmem>>, %arg8: memref<32x32xbf16, #tpu.memory_space<vmem>>, %arg9: memref<1x32xf32, #tpu.memory_space<vmem>>, %arg10: memref<8x32xbf16, #tpu.memory_space<vmem>>, %arg11: memref<8x32xbf16, #tpu.memory_space<vmem>>, %arg12: memref<32x32xbf16, #tpu.memory_space<vmem>>, %arg13: memref<1x32xf32, #tpu.memory_space<vmem>>, %arg14: memref<1x8x32xbf16, #tpu.memory_space<vmem>>, %arg15: memref<1x8x32xf32, #tpu.memory_space<vmem>>) attributes {dimension_semantics = [#tpu.dimension_semantics<parallel>], iteration_bounds = array<i64: 2>, scalar_prefetch = 0 : i64, scratch_operands = 1 : i64, tpu.core_type = #tpu.core_type<tc>, window_params = [{transform_indices = @transform_0, window_bounds = array<i64: 1, 8, 32>}, {transform_indices = @transform_1, window_bounds = array<i64: 1, 8, 32>}, {transform_indices = @transform_2, window_bounds = array<i64: 1, 8, 32>}, {pipeline_mode = #tpu.pipeline_mode<synchronous>, transform_indices = @transform_3, window_bounds = array<i64: 32, 64>}, {pipeline_mode = #tpu.pipeline_mode<synchronous>, transform_indices = @transform_4, window_bounds = array<i64: 1, 64>}, {pipeline_mode = #tpu.pipeline_mode<synchronous>, transform_indices = @transform_5, window_bounds = array<i64: 32, 64>}, {pipeline_mode = #tpu.pipeline_mode<synchronous>, transform_indices = @transform_6, window_bounds = array<i64: 1, 64>}, {pipeline_mode = #tpu.pipeline_mode<synchronous>, transform_indices = @transform_7, window_bounds = array<i64: 32, 32>}, {pipeline_mode = #tpu.pipeline_mode<synchronous>, transform_indices = @transform_8, window_bounds = array<i64: 1, 32>}, {pipeline_mode = #tpu.pipeline_mode<synchronous>, transform_indices = @transform_9, window_bounds = array<i64: 8, 32>}, {pipeline_mode = #tpu.pipeline_mode<synchronous>, transform_indices = @transform_10, window_bounds = array<i64: 8, 32>}, {pipeline_mode = #tpu.pipeline_mode<synchronous>, transform_indices = @transform_11, window_bounds = array<i64: 32, 32>}, {pipeline_mode = #tpu.pipeline_mode<synchronous>, transform_indices = @transform_12, window_bounds = array<i64: 1, 32>}, {transform_indices = @transform_13, window_bounds = array<i64: 1, 8, 32>}]} {
    %c0 = arith.constant 0 : index
    %c0_0 = arith.constant 0 : index
    %c0_1 = arith.constant 0 : index
    %0 = vector.load %arg1[%c0, %c0_0, %c0_1] : memref<1x8x32xbf16, #tpu.memory_space<vmem>>, vector<1x8x32xbf16>
    %1 = vector.shape_cast %0 : vector<1x8x32xbf16> to vector<8x32xbf16>
    %c0_2 = arith.constant 0 : index
    %c0_3 = arith.constant 0 : index
    %c0_4 = arith.constant 0 : index
    %2 = vector.load %arg2[%c0_2, %c0_3, %c0_4] : memref<1x8x32xbf16, #tpu.memory_space<vmem>>, vector<1x8x32xbf16>
    %3 = vector.shape_cast %2 : vector<1x8x32xbf16> to vector<8x32xbf16>
    %c0_5 = arith.constant 0 : index
    %c0_6 = arith.constant 0 : index
    %c0_7 = arith.constant 0 : index
    %4 = vector.load %arg3[%c0_5, %c0_6, %c0_7] : memref<1x8x32xbf16, #tpu.memory_space<vmem>>, vector<1x8x32xbf16>
    %5 = vector.shape_cast %4 : vector<1x8x32xbf16> to vector<8x32xbf16>
    %c0_8 = arith.constant 0 : index
    %c0_9 = arith.constant 0 : index
    %6 = vector.load %arg10[%c0_8, %c0_9] : memref<8x32xbf16, #tpu.memory_space<vmem>>, vector<8x32xbf16>
    %c0_10 = arith.constant 0 : index
    %c0_11 = arith.constant 0 : index
    %7 = vector.load %arg11[%c0_10, %c0_11] : memref<8x32xbf16, #tpu.memory_space<vmem>>, vector<8x32xbf16>
    %c0_12 = arith.constant 0 : index
    %c0_13 = arith.constant 0 : index
    %8 = vector.load %arg4[%c0_12, %c0_13] : memref<32x64xbf16, #tpu.memory_space<vmem>>, vector<32x64xbf16>
    %cst = arith.constant dense<0.000000e+00> : vector<8x64xf32>
    %9 = tpu.matmul %1, %8, %cst {dimension_numbers = #tpu.dot_dimension_numbers<[1], [0], [0], [1], [0, 0, 1, 1], [], []>} : vector<8x32xbf16>, vector<32x64xbf16>, vector<8x64xf32> -> vector<8x64xf32>
    %c0_14 = arith.constant 0 : index
    %c0_15 = arith.constant 0 : index
    %10 = vector.load %arg5[%c0_14, %c0_15] : memref<1x64xf32, #tpu.memory_space<vmem>>, vector<1x64xf32>
    %11 = vector.broadcast %10 : vector<1x64xf32> to vector<8x64xf32>
    %12 = arith.addf %9, %11 : vector<8x64xf32>
    %c0_16 = arith.constant 0 : index
    %c0_17 = arith.constant 0 : index
    %13 = vector.load %arg6[%c0_16, %c0_17] : memref<32x64xbf16, #tpu.memory_space<vmem>>, vector<32x64xbf16>
    %cst_18 = arith.constant dense<0.000000e+00> : vector<8x64xf32>
    %14 = tpu.matmul %3, %13, %cst_18 {dimension_numbers = #tpu.dot_dimension_numbers<[1], [0], [0], [1], [0, 0, 1, 1], [], []>} : vector<8x32xbf16>, vector<32x64xbf16>, vector<8x64xf32> -> vector<8x64xf32>
    %c0_19 = arith.constant 0 : index
    %c0_20 = arith.constant 0 : index
    %15 = vector.load %arg7[%c0_19, %c0_20] : memref<1x64xf32, #tpu.memory_space<vmem>>, vector<1x64xf32>
    %16 = vector.broadcast %15 : vector<1x64xf32> to vector<8x64xf32>
    %17 = arith.addf %14, %16 : vector<8x64xf32>
    %c0_21 = arith.constant 0 : index
    %c0_22 = arith.constant 0 : index
    %18 = vector.load %arg8[%c0_21, %c0_22] : memref<32x32xbf16, #tpu.memory_space<vmem>>, vector<32x32xbf16>
    %cst_23 = arith.constant dense<0.000000e+00> : vector<8x32xf32>
    %19 = tpu.matmul %5, %18, %cst_23 {dimension_numbers = #tpu.dot_dimension_numbers<[1], [0], [0], [1], [0, 0, 1, 1], [], []>} : vector<8x32xbf16>, vector<32x32xbf16>, vector<8x32xf32> -> vector<8x32xf32>
    %c0_24 = arith.constant 0 : index
    %c0_25 = arith.constant 0 : index
    %20 = vector.load %arg9[%c0_24, %c0_25] : memref<1x32xf32, #tpu.memory_space<vmem>>, vector<1x32xf32>
    %21 = vector.broadcast %20 : vector<1x32xf32> to vector<8x32xf32>
    %22 = arith.addf %19, %21 : vector<8x32xf32>
    %23 = vector.extract_strided_slice %12 {offsets = [0, 0], sizes = [8, 32], strides = [1, 1]} : vector<8x64xf32> to vector<8x32xf32>
    %24 = arith.truncf %23 : vector<8x32xf32> to vector<8x32xbf16>
    %25 = arith.mulf %24, %6 : vector<8x32xbf16>
    %26 = vector.extract_strided_slice %12 {offsets = [0, 32], sizes = [8, 32], strides = [1, 1]} : vector<8x64xf32> to vector<8x32xf32>
    %27 = arith.truncf %26 : vector<8x32xf32> to vector<8x32xbf16>
    %28 = arith.mulf %27, %7 : vector<8x32xbf16>
    %29 = arith.addf %25, %28 : vector<8x32xbf16>
    %30 = vector.extract_strided_slice %17 {offsets = [0, 0], sizes = [8, 32], strides = [1, 1]} : vector<8x64xf32> to vector<8x32xf32>
    %31 = arith.truncf %30 : vector<8x32xf32> to vector<8x32xbf16>
    %32 = arith.mulf %31, %6 : vector<8x32xbf16>
    %33 = vector.extract_strided_slice %17 {offsets = [0, 32], sizes = [8, 32], strides = [1, 1]} : vector<8x64xf32> to vector<8x32xf32>
    %34 = arith.truncf %33 : vector<8x32xf32> to vector<8x32xbf16>
    %35 = arith.mulf %34, %7 : vector<8x32xbf16>
    %36 = arith.addf %32, %35 : vector<8x32xbf16>
    %37 = arith.truncf %22 : vector<8x32xf32> to vector<8x32xbf16>
    %38 = vector.shape_cast %29 : vector<8x32xbf16> to vector<1x8x32xbf16>
    %39 = vector.shape_cast %36 : vector<8x32xbf16> to vector<1x8x32xbf16>
    %40 = vector.shape_cast %37 : vector<8x32xbf16> to vector<1x8x32xbf16>
    %41 = vector.extract_strided_slice %38 {offsets = [0, 0, 0], sizes = [1, 8, 8], strides = [1, 1, 1]} : vector<1x8x32xbf16> to vector<1x8x8xbf16>
    %42 = vector.extract_strided_slice %39 {offsets = [0, 0, 0], sizes = [1, 8, 8], strides = [1, 1, 1]} : vector<1x8x32xbf16> to vector<1x8x8xbf16>
    %43 = vector.extract_strided_slice %40 {offsets = [0, 0, 0], sizes = [1, 8, 8], strides = [1, 1, 1]} : vector<1x8x32xbf16> to vector<1x8x8xbf16>
    "tpu.trace_start"() <{level = 10 : i32, message = "bqd,bkd->bqk"}> : () -> ()
    %cst_26 = arith.constant dense<0.000000e+00> : vector<1x8x8xf32>
    %44 = tpu.matmul %41, %42, %cst_26 {dimension_numbers = #tpu.dot_dimension_numbers<[2], [2], [1], [1], [0, 0, 0, 1, 1, 1], [0], [0]>} : vector<1x8x8xbf16>, vector<1x8x8xbf16>, vector<1x8x8xf32> -> vector<1x8x8xf32>
    "tpu.trace_stop"() : () -> ()
    %cst_27 = arith.constant dense<0xFF800000> : vector<1x8xf32>
    %45 = vector.multi_reduction <maximumf>, %44, %cst_27 [2] : vector<1x8x8xf32> to vector<1x8xf32>
    %46 = vector.shape_cast %45 : vector<1x8xf32> to vector<1x8x1xf32>
    %47 = vector.broadcast %46 : vector<1x8x1xf32> to vector<1x8x8xf32>
    %48 = arith.subf %44, %47 : vector<1x8x8xf32>
    %49 = math.exp %48 : vector<1x8x8xf32>
    %cst_28 = arith.constant dense<0.000000e+00> : vector<1x8xf32>
    %50 = vector.multi_reduction <add>, %49, %cst_28 [2] : vector<1x8x8xf32> to vector<1x8xf32>
    %51 = vector.shape_cast %50 : vector<1x8xf32> to vector<1x8x1xf32>
    %52 = tpu.reciprocal %51 {approx = true} : vector<1x8x1xf32> -> vector<1x8x1xf32>
    %53 = vector.broadcast %52 : vector<1x8x1xf32> to vector<1x8x8xf32>
    %54 = arith.mulf %49, %53 : vector<1x8x8xf32>
    %55 = arith.truncf %54 : vector<1x8x8xf32> to vector<1x8x8xbf16>
    "tpu.trace_start"() <{level = 10 : i32, message = "bqk,bkd->bqd"}> : () -> ()
    %cst_29 = arith.constant dense<0.000000e+00> : vector<1x8x8xf32>
    %56 = tpu.matmul %55, %43, %cst_29 {dimension_numbers = #tpu.dot_dimension_numbers<[2], [1], [1], [2], [0, 0, 0, 1, 1, 2], [0], [0]>} : vector<1x8x8xbf16>, vector<1x8x8xbf16>, vector<1x8x8xf32> -> vector<1x8x8xf32>
    "tpu.trace_stop"() : () -> ()
    %c0_30 = arith.constant 0 : index
    %c0_31 = arith.constant 0 : index
    %c0_32 = arith.constant 0 : index
    %57 = vector.load %arg15[%c0_30, %c0_31, %c0_32] : memref<1x8x32xf32, #tpu.memory_space<vmem>>, vector<1x8x8xf32>
    tpu.vector_store %arg15[%c0_30, %c0_31, %c0_32], %56 {strides = array<i32>} : memref<1x8x32xf32, #tpu.memory_space<vmem>>, vector<1x8x8xf32>,
    %58 = vector.extract_strided_slice %38 {offsets = [0, 0, 8], sizes = [1, 8, 8], strides = [1, 1, 1]} : vector<1x8x32xbf16> to vector<1x8x8xbf16>
    %59 = vector.extract_strided_slice %39 {offsets = [0, 0, 8], sizes = [1, 8, 8], strides = [1, 1, 1]} : vector<1x8x32xbf16> to vector<1x8x8xbf16>
    %60 = vector.extract_strided_slice %40 {offsets = [0, 0, 8], sizes = [1, 8, 8], strides = [1, 1, 1]} : vector<1x8x32xbf16> to vector<1x8x8xbf16>
    "tpu.trace_start"() <{level = 10 : i32, message = "bqd,bkd->bqk"}> : () -> ()
    %cst_33 = arith.constant dense<0.000000e+00> : vector<1x8x8xf32>
    %61 = tpu.matmul %58, %59, %cst_33 {dimension_numbers = #tpu.dot_dimension_numbers<[2], [2], [1], [1], [0, 0, 0, 1, 1, 1], [0], [0]>} : vector<1x8x8xbf16>, vector<1x8x8xbf16>, vector<1x8x8xf32> -> vector<1x8x8xf32>
    "tpu.trace_stop"() : () -> ()
    %cst_34 = arith.constant dense<0xFF800000> : vector<1x8xf32>
    %62 = vector.multi_reduction <maximumf>, %61, %cst_34 [2] : vector<1x8x8xf32> to vector<1x8xf32>
    %63 = vector.shape_cast %62 : vector<1x8xf32> to vector<1x8x1xf32>
    %64 = vector.broadcast %63 : vector<1x8x1xf32> to vector<1x8x8xf32>
    %65 = arith.subf %61, %64 : vector<1x8x8xf32>
    %66 = math.exp %65 : vector<1x8x8xf32>
    %cst_35 = arith.constant dense<0.000000e+00> : vector<1x8xf32>
    %67 = vector.multi_reduction <add>, %66, %cst_35 [2] : vector<1x8x8xf32> to vector<1x8xf32>
    %68 = vector.shape_cast %67 : vector<1x8xf32> to vector<1x8x1xf32>
    %69 = tpu.reciprocal %68 {approx = true} : vector<1x8x1xf32> -> vector<1x8x1xf32>
    %70 = vector.broadcast %69 : vector<1x8x1xf32> to vector<1x8x8xf32>
    %71 = arith.mulf %66, %70 : vector<1x8x8xf32>
    %72 = arith.truncf %71 : vector<1x8x8xf32> to vector<1x8x8xbf16>
    "tpu.trace_start"() <{level = 10 : i32, message = "bqk,bkd->bqd"}> : () -> ()
    %cst_36 = arith.constant dense<0.000000e+00> : vector<1x8x8xf32>
    %73 = tpu.matmul %72, %60, %cst_36 {dimension_numbers = #tpu.dot_dimension_numbers<[2], [1], [1], [2], [0, 0, 0, 1, 1, 2], [0], [0]>} : vector<1x8x8xbf16>, vector<1x8x8xbf16>, vector<1x8x8xf32> -> vector<1x8x8xf32>
    "tpu.trace_stop"() : () -> ()
    %c0_37 = arith.constant 0 : index
    %c0_38 = arith.constant 0 : index
    %c8 = arith.constant 8 : index
    %74 = vector.load %arg15[%c0_37, %c0_38, %c8] : memref<1x8x32xf32, #tpu.memory_space<vmem>>, vector<1x8x8xf32>
    tpu.vector_store %arg15[%c0_37, %c0_38, %c8], %73 {strides = array<i32>} : memref<1x8x32xf32, #tpu.memory_space<vmem>>, vector<1x8x8xf32>,
    %75 = vector.extract_strided_slice %38 {offsets = [0, 0, 16], sizes = [1, 8, 8], strides = [1, 1, 1]} : vector<1x8x32xbf16> to vector<1x8x8xbf16>
    %76 = vector.extract_strided_slice %39 {offsets = [0, 0, 16], sizes = [1, 8, 8], strides = [1, 1, 1]} : vector<1x8x32xbf16> to vector<1x8x8xbf16>
    %77 = vector.extract_strided_slice %40 {offsets = [0, 0, 16], sizes = [1, 8, 8], strides = [1, 1, 1]} : vector<1x8x32xbf16> to vector<1x8x8xbf16>
    "tpu.trace_start"() <{level = 10 : i32, message = "bqd,bkd->bqk"}> : () -> ()
    %cst_39 = arith.constant dense<0.000000e+00> : vector<1x8x8xf32>
    %78 = tpu.matmul %75, %76, %cst_39 {dimension_numbers = #tpu.dot_dimension_numbers<[2], [2], [1], [1], [0, 0, 0, 1, 1, 1], [0], [0]>} : vector<1x8x8xbf16>, vector<1x8x8xbf16>, vector<1x8x8xf32> -> vector<1x8x8xf32>
    "tpu.trace_stop"() : () -> ()
    %cst_40 = arith.constant dense<0xFF800000> : vector<1x8xf32>
    %79 = vector.multi_reduction <maximumf>, %78, %cst_40 [2] : vector<1x8x8xf32> to vector<1x8xf32>
    %80 = vector.shape_cast %79 : vector<1x8xf32> to vector<1x8x1xf32>
    %81 = vector.broadcast %80 : vector<1x8x1xf32> to vector<1x8x8xf32>
    %82 = arith.subf %78, %81 : vector<1x8x8xf32>
    %83 = math.exp %82 : vector<1x8x8xf32>
    %cst_41 = arith.constant dense<0.000000e+00> : vector<1x8xf32>
    %84 = vector.multi_reduction <add>, %83, %cst_41 [2] : vector<1x8x8xf32> to vector<1x8xf32>
    %85 = vector.shape_cast %84 : vector<1x8xf32> to vector<1x8x1xf32>
    %86 = tpu.reciprocal %85 {approx = true} : vector<1x8x1xf32> -> vector<1x8x1xf32>
    %87 = vector.broadcast %86 : vector<1x8x1xf32> to vector<1x8x8xf32>
    %88 = arith.mulf %83, %87 : vector<1x8x8xf32>
    %89 = arith.truncf %88 : vector<1x8x8xf32> to vector<1x8x8xbf16>
    "tpu.trace_start"() <{level = 10 : i32, message = "bqk,bkd->bqd"}> : () -> ()
    %cst_42 = arith.constant dense<0.000000e+00> : vector<1x8x8xf32>
    %90 = tpu.matmul %89, %77, %cst_42 {dimension_numbers = #tpu.dot_dimension_numbers<[2], [1], [1], [2], [0, 0, 0, 1, 1, 2], [0], [0]>} : vector<1x8x8xbf16>, vector<1x8x8xbf16>, vector<1x8x8xf32> -> vector<1x8x8xf32>
    "tpu.trace_stop"() : () -> ()
    %c0_43 = arith.constant 0 : index
    %c0_44 = arith.constant 0 : index
    %c16 = arith.constant 16 : index
    %91 = vector.load %arg15[%c0_43, %c0_44, %c16] : memref<1x8x32xf32, #tpu.memory_space<vmem>>, vector<1x8x8xf32>
    tpu.vector_store %arg15[%c0_43, %c0_44, %c16], %90 {strides = array<i32>} : memref<1x8x32xf32, #tpu.memory_space<vmem>>, vector<1x8x8xf32>,
    %92 = vector.extract_strided_slice %38 {offsets = [0, 0, 24], sizes = [1, 8, 8], strides = [1, 1, 1]} : vector<1x8x32xbf16> to vector<1x8x8xbf16>
    %93 = vector.extract_strided_slice %39 {offsets = [0, 0, 24], sizes = [1, 8, 8], strides = [1, 1, 1]} : vector<1x8x32xbf16> to vector<1x8x8xbf16>
    %94 = vector.extract_strided_slice %40 {offsets = [0, 0, 24], sizes = [1, 8, 8], strides = [1, 1, 1]} : vector<1x8x32xbf16> to vector<1x8x8xbf16>
    "tpu.trace_start"() <{level = 10 : i32, message = "bqd,bkd->bqk"}> : () -> ()
    %cst_45 = arith.constant dense<0.000000e+00> : vector<1x8x8xf32>
    %95 = tpu.matmul %92, %93, %cst_45 {dimension_numbers = #tpu.dot_dimension_numbers<[2], [2], [1], [1], [0, 0, 0, 1, 1, 1], [0], [0]>} : vector<1x8x8xbf16>, vector<1x8x8xbf16>, vector<1x8x8xf32> -> vector<1x8x8xf32>
    "tpu.trace_stop"() : () -> ()
    %cst_46 = arith.constant dense<0xFF800000> : vector<1x8xf32>
    %96 = vector.multi_reduction <maximumf>, %95, %cst_46 [2] : vector<1x8x8xf32> to vector<1x8xf32>
    %97 = vector.shape_cast %96 : vector<1x8xf32> to vector<1x8x1xf32>
    %98 = vector.broadcast %97 : vector<1x8x1xf32> to vector<1x8x8xf32>
    %99 = arith.subf %95, %98 : vector<1x8x8xf32>
    %100 = math.exp %99 : vector<1x8x8xf32>
    %cst_47 = arith.constant dense<0.000000e+00> : vector<1x8xf32>
    %101 = vector.multi_reduction <add>, %100, %cst_47 [2] : vector<1x8x8xf32> to vector<1x8xf32>
    %102 = vector.shape_cast %101 : vector<1x8xf32> to vector<1x8x1xf32>
    %103 = tpu.reciprocal %102 {approx = true} : vector<1x8x1xf32> -> vector<1x8x1xf32>
    %104 = vector.broadcast %103 : vector<1x8x1xf32> to vector<1x8x8xf32>
    %105 = arith.mulf %100, %104 : vector<1x8x8xf32>
    %106 = arith.truncf %105 : vector<1x8x8xf32> to vector<1x8x8xbf16>
    "tpu.trace_start"() <{level = 10 : i32, message = "bqk,bkd->bqd"}> : () -> ()
    %cst_48 = arith.constant dense<0.000000e+00> : vector<1x8x8xf32>
    %107 = tpu.matmul %106, %94, %cst_48 {dimension_numbers = #tpu.dot_dimension_numbers<[2], [1], [1], [2], [0, 0, 0, 1, 1, 2], [0], [0]>} : vector<1x8x8xbf16>, vector<1x8x8xbf16>, vector<1x8x8xf32> -> vector<1x8x8xf32>
    "tpu.trace_stop"() : () -> ()
    %c0_49 = arith.constant 0 : index
    %c0_50 = arith.constant 0 : index
    %c24 = arith.constant 24 : index
    %108 = vector.load %arg15[%c0_49, %c0_50, %c24] : memref<1x8x32xf32, #tpu.memory_space<vmem>>, vector<1x8x8xf32>
    tpu.vector_store %arg15[%c0_49, %c0_50, %c24], %107 {strides = array<i32>} : memref<1x8x32xf32, #tpu.memory_space<vmem>>, vector<1x8x8xf32>,
    %c0_51 = arith.constant 0 : index
    %c0_52 = arith.constant 0 : index
    %c0_53 = arith.constant 0 : index
    %109 = vector.load %arg15[%c0_51, %c0_52, %c0_53] : memref<1x8x32xf32, #tpu.memory_space<vmem>>, vector<1x8x32xf32>
    %110 = vector.shape_cast %109 : vector<1x8x32xf32> to vector<8x32xf32>
    %111 = arith.truncf %110 : vector<8x32xf32> to vector<8x32xbf16>
    %c0_54 = arith.constant 0 : index
    %c0_55 = arith.constant 0 : index
    %112 = vector.load %arg12[%c0_54, %c0_55] : memref<32x32xbf16, #tpu.memory_space<vmem>>, vector<32x32xbf16>
    %cst_56 = arith.constant dense<0.000000e+00> : vector<8x32xf32>
    %113 = tpu.matmul %111, %112, %cst_56 {dimension_numbers = #tpu.dot_dimension_numbers<[1], [0], [0], [1], [0, 0, 1, 1], [], []>} : vector<8x32xbf16>, vector<32x32xbf16>, vector<8x32xf32> -> vector<8x32xf32>
    %c0_57 = arith.constant 0 : index
    %c0_58 = arith.constant 0 : index
    %114 = vector.load %arg13[%c0_57, %c0_58] : memref<1x32xf32, #tpu.memory_space<vmem>>, vector<1x32xf32>
    %115 = vector.broadcast %114 : vector<1x32xf32> to vector<8x32xf32>
    %116 = arith.addf %113, %115 : vector<8x32xf32>
    %117 = vector.shape_cast %116 : vector<8x32xf32> to vector<1x8x32xf32>
    %118 = arith.truncf %117 : vector<1x8x32xf32> to vector<1x8x32xbf16>
    %c0_59 = arith.constant 0 : index
    %c0_60 = arith.constant 0 : index
    %c0_61 = arith.constant 0 : index
    %119 = vector.load %arg14[%c0_59, %c0_60, %c0_61] : memref<1x8x32xbf16, #tpu.memory_space<vmem>>, vector<1x8x32xbf16>
    tpu.vector_store %arg14[%c0_59, %c0_60, %c0_61], %118 {strides = array<i32>} : memref<1x8x32xbf16, #tpu.memory_space<vmem>>, vector<1x8x32xbf16>,
    return
  }
  func.func @transform_0(%arg0: i32) -> (i32, i32, i32) {
    %c0_i32 = arith.constant 0 : i32
    %c0_i32_0 = arith.constant 0 : i32
    %c0_i32_1 = arith.constant 0 : i32
    return %arg0, %c0_i32, %c0_i32_0 : i32, i32, i32
  }
  func.func @transform_1(%arg0: i32) -> (i32, i32, i32) {
    %c0_i32 = arith.constant 0 : i32
    %c0_i32_0 = arith.constant 0 : i32
    %c0_i32_1 = arith.constant 0 : i32
    return %arg0, %c0_i32, %c0_i32_0 : i32, i32, i32
  }
  func.func @transform_2(%arg0: i32) -> (i32, i32, i32) {
    %c0_i32 = arith.constant 0 : i32
    %c0_i32_0 = arith.constant 0 : i32
    %c0_i32_1 = arith.constant 0 : i32
    return %arg0, %c0_i32, %c0_i32_0 : i32, i32, i32
  }
  func.func @transform_3(%arg0: i32) -> (i32, i32) {
    %c0_i32 = arith.constant 0 : i32
    %c0_i32_0 = arith.constant 0 : i32
    %c0_i32_1 = arith.constant 0 : i32
    return %c0_i32, %c0_i32_0 : i32, i32
  }
  func.func @transform_4(%arg0: i32) -> (i32, i32) {
    %c0_i32 = arith.constant 0 : i32
    %c0_i32_0 = arith.constant 0 : i32
    %c0_i32_1 = arith.constant 0 : i32
    return %c0_i32, %c0_i32_0 : i32, i32
  }
  func.func @transform_5(%arg0: i32) -> (i32, i32) {
    %c0_i32 = arith.constant 0 : i32
    %c0_i32_0 = arith.constant 0 : i32
    %c0_i32_1 = arith.constant 0 : i32
    return %c0_i32, %c0_i32_0 : i32, i32
  }
  func.func @transform_6(%arg0: i32) -> (i32, i32) {
    %c0_i32 = arith.constant 0 : i32
    %c0_i32_0 = arith.constant 0 : i32
    %c0_i32_1 = arith.constant 0 : i32
    return %c0_i32, %c0_i32_0 : i32, i32
  }
  func.func @transform_7(%arg0: i32) -> (i32, i32) {
    %c0_i32 = arith.constant 0 : i32
    %c0_i32_0 = arith.constant 0 : i32
    %c0_i32_1 = arith.constant 0 : i32
    return %c0_i32, %c0_i32_0 : i32, i32
  }
  func.func @transform_8(%arg0: i32) -> (i32, i32) {
    %c0_i32 = arith.constant 0 : i32
    %c0_i32_0 = arith.constant 0 : i32
    %c0_i32_1 = arith.constant 0 : i32
    return %c0_i32, %c0_i32_0 : i32, i32
  }
  func.func @transform_9(%arg0: i32) -> (i32, i32) {
    %c0_i32 = arith.constant 0 : i32
    %c0_i32_0 = arith.constant 0 : i32
    %c0_i32_1 = arith.constant 0 : i32
    return %c0_i32, %c0_i32_0 : i32, i32
  }
  func.func @transform_10(%arg0: i32) -> (i32, i32) {
    %c0_i32 = arith.constant 0 : i32
    %c0_i32_0 = arith.constant 0 : i32
    %c0_i32_1 = arith.constant 0 : i32
    return %c0_i32, %c0_i32_0 : i32, i32
  }
  func.func @transform_11(%arg0: i32) -> (i32, i32) {
    %c0_i32 = arith.constant 0 : i32
    %c0_i32_0 = arith.constant 0 : i32
    %c0_i32_1 = arith.constant 0 : i32
    return %c0_i32, %c0_i32_0 : i32, i32
  }
  func.func @transform_12(%arg0: i32) -> (i32, i32) {
    %c0_i32 = arith.constant 0 : i32
    %c0_i32_0 = arith.constant 0 : i32
    %c0_i32_1 = arith.constant 0 : i32
    return %c0_i32, %c0_i32_0 : i32, i32
  }
  func.func @transform_13(%arg0: i32) -> (i32, i32, i32) {
    %c0_i32 = arith.constant 0 : i32
    %c0_i32_0 = arith.constant 0 : i32
    %c0_i32_1 = arith.constant 0 : i32
    return %arg0, %c0_i32, %c0_i32_0 : i32, i32, i32
  }
}

</mosaic_0001>

<bundles_post_ra>
// kernel: tpu_custom_call.1
= control target key start
LH: loop header
LB: loop body
LE: loop exit
PB: predicated region body
PF: predicated region fallthrough
CT: control target
= control target key end

     0   :  { %s2758_s0 = inlined_call_operand.hbm [shape: bf16[2,8,32], index: 0, kind: input, shape index: {}]   ;;  %s2759_s1 = inlined_call_operand.hbm [shape: bf16[2,8,32], index: 1, kind: input, shape index: {}]   ;;  %s2760_s2 = inlined_call_operand.hbm [shape: bf16[2,8,32], index: 2, kind: input, shape index: {}]   ;;  %s2761_s3 = inlined_call_operand.hbm [shape: bf16[32,64], index: 3, kind: input, shape index: {}]   ;;  %s2762_s4 = inlined_call_operand.hbm [shape: f32[1,64], index: 4, kind: input, shape index: {}]   ;;  %s2763_s5 = inlined_call_operand.hbm [shape: bf16[32,64], index: 5, kind: input, shape index: {}]   ;;  %s2764_s6 = inlined_call_operand.hbm [shape: f32[1,64], index: 6, kind: input, shape index: {}]   ;;  %s2765_s7 = inlined_call_operand.hbm [shape: bf16[32,32], index: 7, kind: input, shape index: {}]   ;;  %s2766_s8 = inlined_call_operand.hbm [shape: f32[1,32], index: 8, kind: input, shape index: {}]   ;;  %s2767_s9 = inlined_call_operand.vmem [shape: bf16[8,32], index: 9, kind: input, shape index: {}]   ;;  %s2768_s10 = inlined_call_operand.hbm [shape: bf16[8,32], index: 10, kind: input, shape index: {}]   ;;  %s2769_s11 = inlined_call_operand.vmem [shape: bf16[32,32], index: 11, kind: input, shape index: {}]   ;;  %s2770_s12 = inlined_call_operand.vmem [shape: f32[1,32], index: 12, kind: input, shape index: {}]   ;;  %s2771_s13 = inlined_call_operand.hbm [shape: bf16[2,8,32], index: 13, kind: output, shape index: {}]  }
   0x1   :  { %2794 = sst [smem:[#allocation34_spill]] %s2761_s3 }
   0x2   :  { %2795 = sst [smem:[#allocation35_spill]] %s2763_s5 }
   0x3   :  { %2796 = sst [smem:[#allocation36_spill]] %s2765_s7 }
   0x4   :  { %2797 = sst [smem:[#allocation37_spill]] %s2767_s9 }
   0x5   :  { %2798 = sst [smem:[#allocation38_spill]] %s2769_s11 }
   0x6   :  { %2799 = sst [smem:[#allocation39_spill]] %s2770_s12 }
   0x7   :  { %2800 = sst [smem:[#allocation40_spill]] %s2771_s13 }
   0x8   :  { %18 = vsyncpa [#allocation4], 0 }
   0x9   :  { %20 = vsyncpa [#allocation4 + $0x1], 0 }
   0xa   :  { %21 = vsyncpa [#allocation7], 0 }
   0xb   :  { %23 = vsyncpa [#allocation7 + $0x1], 0 }
   0xc   :  { %24 = vsyncpa [#allocation10], 0 }
   0xd   :  { %25 = vsyncpa [#allocation13], 0 }
   0xe   :  { %26 = vsyncpa [#allocation16], 0 }
   0xf   :  { %27 = vsyncpa [#allocation19], 0 }
  0x10   :  { %28 = vsyncpa [#allocation5], 0 }
  0x11   :  { %30 = vsyncpa [#allocation5 + $0x1], 0  ;;  %s2346_s25 = smov 0   ;;  %s2348_s26 = smov 0  }
  0x12   :  { %s2350_s27 = smov 0   ;;  %s2352_s28 = smov 0  }
  0x13 LB: > { %2801 = sst [smem:[#allocation28_spill]] %s2239_s25  ;;  %s2253_s29 = smov [#allocation9]   ;;  %s2251_s28 = sphi %s2352_s28, %s2844_s28   ;;  %s2247_s27 = sphi %s2350_s27, %s2848_s27   ;;  %s2243_s26 = sphi %s2348_s26, %s2847_s26   ;;  %s2239_s25 = sphi %s2346_s25, %s2846_s25  }
  0x14   : > { %2802 = sst [smem:[#allocation29_spill]] %s2251_s28  ;;  %s367_s30 = sshll.u32 %s2253_s29, 4  ;;  %s368_s30 = int_to_ptr.vmem [resolvable:$true] %s367_s30 }
  0x15   : > { %s2367_s14 = sadd.s32 4294967295, %s2251_s28   ;;  %p1573_p0 = scmp.ge.s32.totalorder %s2251_s28, 1 }
  0x16   : > { %p2782_p1 = scmp.eq.s32.totalorder %s2367_s14, 0  ;;  %p355_p2 = scmp.lt.s32.totalorder %s2251_s28, 3 }
  0x17   : > { %s2254_s16 = smov [#allocation12]   ;;  %s2255_s19 = smov [#allocation15]  }
  0x18   : > { %p2372_p3 = pnand %p1573_p0, %p355_p2  ;;  %s391_s17 = sshll.u32 %s2254_s16, 4  ;;  %s2385_s17 = int_to_ptr.vmem [resolvable:$true] %s391_s17 }
  0x19   : > { %s415_s20 = sshll.u32 %s2255_s19, 4  ;;  %s1912_s22 = scalar_lea.vmem %s368_s30, 256  ;;  %s2387_s20 = int_to_ptr.vmem [resolvable:$true] %s415_s20 }
  0x1a   : > { %s2803_s15 = scalar_select %p2372_p3, 1, 0 }
  0x1b   : > { %p1773_p5 = pneg %p2372_p3  ;;  %p1913_p8 = scmp.ne.s32.totalorder %s368_s30, %s1912_s22 }
  0x1c   : > { %p1920_p11 = scmp.lt.s32.totalorder %s368_s30, %s368_s30  ;;  %p1921_p12 = scmp.lt.s32.totalorder %s1912_s22, %s1912_s22 }
  0x1d   : > { %p2381_p6 = pnand %p1773_p5, %p2782_p1 }
  0x1e   : > { %p1922_p13 = por %p1921_p12, %p1920_p11 }
  0x1f   : > { %s2804_s18 = scalar_select %p2381_p6, 1, 0 }
  0x20   : > { %p2391_p7 = pneg %p2381_p6 }
  0x22   : > { %s2805_s21 = scalar_select %p2391_p7, 1, 0 }
  0x23   : > { %p1915_p9 = pnand %p1913_p8, %p2391_p7 }
  0x25   : > { %p1916_p10 = pneg %p1915_p9 }
  0x27   : > { %p1923_p0 = pnand %p1922_p13, %p1916_p10 }
  0x29   : > { %1926 = shalt.err (!%p1923_p0)
}
  0x2a   : > { %s2256_s23 = smov 64   ;;  %s2257_s24 = smov 4  }
  0x2b   : > { %s2806_s3 = sld [smem:[#allocation34_spill]]  ;;  %s1938_s19 = scalar_lea.vmem %s2385_s17, 256 }
  0x2c   : > { %p1939_p2 = scmp.ne.s32.totalorder %s2385_s17, %s1938_s19  ;;  %p1946_p9 = scmp.lt.s32.totalorder %s2385_s17, %s2385_s17 }
  0x2d   : > { %p1947_p10 = scmp.lt.s32.totalorder %s1938_s19, %s1938_s19 }
  0x2e   : > { %p1941_p5 = pnand %p1939_p2, %p2391_p7 }
  0x2f   : > { %p1948_p11 = por %p1947_p10, %p1946_p9 }
  0x30   : > { %p1942_p8 = pneg %p1941_p5 }
  0x31   : > { %1776 = dma.hbm_to_vmem [thread:$0]  (!%p2381_p6), %s2806_s3, 256, %s368_s30, [#allocation10], %s2256_s23, %s2256_s23, %s2257_s24  }
  0x32   : > { %p1949_p12 = pnand %p1948_p11, %p1942_p8 }
  0x34   : > { %1952 = shalt.err (!%p1949_p12)
}
  0x35   : > { %s2807_s5 = sld [smem:[#allocation35_spill]]  ;;  %s1964_s30 = scalar_lea.vmem %s2387_s20, 256 }
  0x36   : > { %p1965_p13 = scmp.ne.s32.totalorder %s2387_s20, %s1964_s30  ;;  %p1972_p5 = scmp.lt.s32.totalorder %s2387_s20, %s2387_s20 }
  0x37   : > { %p1973_p8 = scmp.lt.s32.totalorder %s1964_s30, %s1964_s30 }
  0x38   : > { %p1967_p0 = pnand %p1965_p13, %p2391_p7 }
  0x39   : > { %p1974_p9 = por %p1973_p8, %p1972_p5 }
  0x3a   : > { %p1968_p2 = pneg %p1967_p0 }
  0x3b   : > { %1782 = dma.hbm_to_vmem [thread:$0]  (!%p2381_p6), %s2807_s5, 256, %s2385_s17, [#allocation13], %s2256_s23, %s2256_s23, %s2257_s24  }
  0x3c   : > { %p1975_p10 = pnand %p1974_p9, %p1968_p2 }
  0x3e   : > { %1978 = shalt.err (!%p1975_p10)
}
  0x3f   : > { %s2808_s7 = sld [smem:[#allocation36_spill]]  ;;  %s1572_s17 = sadd.s32 4294967294, %s2251_s28  }
  0x40   : > { %s2428_s16 = sadd.s32 1, %s2251_s28   ;;  %s43_s19 = sadd.s32 1, %s2247_s27 }
  0x41   : > { %2809 = sst [smem:[#allocation30_spill]] %s2428_s16  ;;  %s40_s22 = ssub.s32 %s2251_s28, %s2428_s16 }
  0x42   : > { %p50_p11 = scmp.ne.s32.totalorder %s2247_s27, %s2243_s26  ;;  %p41_p12 = scmp.eq.s32.totalorder %s40_s22, 0 }
  0x43   : > { %p51_p13 = scmp.eq.s32.totalorder %s2251_s28, 0  ;;  %p56_p0 = scmp.ne.s32.totalorder %s2243_s26, %s2239_s25 }
  0x44   : > { %p342_p2 = scmp.eq.s32.totalorder %s2367_s14, 1  ;;  %p348_p10 = scmp.eq.s32.totalorder %s1572_s17, 1 }
  0x45   : > { %1788 = dma.hbm_to_vmem [thread:$0]  (!%p2381_p6), %s2808_s7, 256, %s2387_s20, [#allocation16], %s2256_s23, %s2256_s23, %s2257_s24  }
  0x46   : > { %s2440_s30 = scalar_select %p41_p12, %s2247_s27, %s43_s19  }
  0x47   : > { %p52_p5 = por %p51_p13, %p50_p11  ;;  %p2444_p8 = por %p2782_p1, %p56_p0 }
  0x48   : > { %2810 = sst [smem:[#allocation31_spill]] %s2440_s30  ;;  %p2448_p9 = por %p342_p2, %p50_p11 }
  0x49   : > { %s2811_s20 = scalar_select %p2444_p8, 1, 0 }
  0x4a   : > { %s2812_s23 = scalar_select %p2448_p9, 1, 0 }
  0x4b   : > { %p1816_p4 = scmp.lt.s32.totalorder %s2251_s28, 2  ;;  %s2774_s24 = sand.u32 1, %s2247_s27  }
  0x4c   : > { %2813 = sst [smem:[#allocation32_spill]] %s2812_s23  ;;  %p2454_p3 = por %p348_p10, %p56_p0 }
  0x4d   : > { %s2460_s29 = sshll.u32 %s2774_s24, 2  ;;  %s2463_s19 = sshll.u32 %s2251_s28, 6 }
  0x4e   : > { %s2814_s13 = scalar_select %p2454_p3, 1, 0 }
  0x4f   : > { %p2465_p12 = pnand %p1816_p4, %p52_p5  ;;  %s478_s3 = sand.u32 1, %s2251_s28  }
  0x50   : > { %2815 = sst [smem:[#allocation33_spill]] %s2814_s13  ;;  %s2474_s7 = scalar_lea.hbm %s2759_s1, %s2463_s19 }
  0x51   : > { %s2816_s22 = scalar_select %p2465_p12, 1, 0 }
  0x52   : > { %s482_s24 = scalar_lea.vmem [#allocation6], %s2460_s29  ;;  %s2477_s16 = scalar_lea.sflag [#allocation7], %s478_s3 }
  0x53   : > { %s489_s30 = sshll.u32 %s482_s24, 4  ;;  %s1979_s13 = scalar_lea.hbm %s2474_s7, 64  ;;  %s490_s30 = int_to_ptr.vmem [resolvable:$true] %s489_s30 }
  0x54   : > { %p1980_p4 = scmp.ne.s32.totalorder %s2474_s7, %s1979_s13  ;;  %p2483_p11 = pneg %p2465_p12 }
  0x55   : > { %s1984_s28 = scalar_lea.hbm %s2759_s1, 128  ;;  %p1985_p2 = scmp.lt.s32.totalorder %s2474_s7, %s2759_s1 }
  0x56   : > { %s2817_s25 = scalar_select %p2483_p11, 1, 0 }
  0x57   : > { %p1982_p13 = pnand %p2483_p11, %p1980_p4  ;;  %p1986_p5 = scmp.lt.s32.totalorder %s1984_s28, %s1979_s13 }
  0x59   : > { %p1983_p0 = pneg %p1982_p13  ;;  %p1987_p10 = por %p1986_p5, %p1985_p2 }
  0x5b   : > { %p1988_p1 = pnand %p1987_p10, %p1983_p0 }
  0x5d   : > { %1991 = shalt.err (!%p1988_p1)
}
  0x5e   : > { %s1992_s3 = scalar_lea.vmem %s490_s30, 64  ;;  %s2258_s12 = smov [#allocation6]  }
  0x5f   : > { %p1993_p3 = scmp.ne.s32.totalorder %s490_s30, %s1992_s3  ;;  %s1997_s11 = sshll.u32 %s2258_s12, 4  ;;  %s1998_s11 = int_to_ptr.vmem [resolvable:$false] %s1997_s11 }
  0x60   : > { %s1999_s9 = scalar_lea.vmem %s1998_s11, 128  ;;  %p2000_p4 = scmp.lt.s32.totalorder %s490_s30, %s1998_s11 }
  0x61   : > { %p1995_p9 = pnand %p1993_p3, %p2483_p11  ;;  %p2001_p13 = scmp.lt.s32.totalorder %s1999_s9, %s1992_s3 }
  0x63   : > { %p1996_p8 = pneg %p1995_p9  ;;  %p2002_p6 = por %p2001_p13, %p2000_p4 }
  0x65   : > { %p2003_p7 = pnand %p2002_p6, %p1996_p8 }
  0x67   : > { %2006 = shalt.err (!%p2003_p7)
}
  0x68   : > { %1801 = dma.hbm_to_vmem [thread:$0]  (!%p2465_p12), %s2474_s7, 64, %s490_s30, %s2477_s16  }
  0x69   : > { %s2259_s28 = smov [#allocation11]   ;;  %s2260_s13 = smov [#allocation14]  }
  0x6a   : > { %s381_s23 = sshll.u32 %s2259_s28, 4  ;;  %s405_s5 = sshll.u32 %s2260_s13, 4  ;;  %s382_s23 = int_to_ptr.vmem [resolvable:$true] %s381_s23  ;;  %s406_s5 = int_to_ptr.vmem [resolvable:$true] %s405_s5 }
  0x6b   : > { %s2018_s17 = scalar_lea.vmem %s382_s23, 16  ;;  %p2818_p3 = scmp.ne.s32.totalorder %s2805_s21, 0 }
  0x6c   : > { %p2019_p1 = scmp.ne.s32.totalorder %s382_s23, %s2018_s17  ;;  %s2025_s9 = scalar_lea.vmem %s382_s23, 32 }
  0x6d   : > { %p2026_p2 = scmp.lt.s32.totalorder %s382_s23, %s382_s23  ;;  %p2027_p6 = scmp.lt.s32.totalorder %s2025_s9, %s2018_s17 }
  0x6e   : > { %p2021_p9 = pnand %p2019_p1, %p2818_p3 }
  0x6f   : > { %p2028_p7 = por %p2027_p6, %p2026_p2 }
  0x70   : > { %p2022_p0 = pneg %p2021_p9 }
  0x72   : > { %p2029_p8 = pnand %p2028_p7, %p2022_p0 }
  0x74   : > { %2032 = shalt.err (!%p2029_p8)
}
  0x75   : > { %p2819_p5 = scmp.ne.s32.totalorder %s2804_s18, 0  ;;  %s2044_s12 = scalar_lea.vmem %s406_s5, 16 }
  0x76   : > { %p2045_p10 = scmp.ne.s32.totalorder %s406_s5, %s2044_s12  ;;  %s2051_s30 = scalar_lea.vmem %s406_s5, 32 }
  0x77   : > { %1779 = dma.hbm_to_vmem [thread:$0]  (!%p2819_p5), %s2762_s4, 16, %s382_s23, [#allocation10]  }
  0x78   : > { %p2047_p4 = pnand %p2045_p10, %p2818_p3  ;;  %p2052_p1 = scmp.lt.s32.totalorder %s406_s5, %s406_s5 }
  0x79   : > { %p2053_p9 = scmp.lt.s32.totalorder %s2051_s30, %s2044_s12 }
  0x7a   : > { %p2048_p13 = pneg %p2047_p4 }
  0x7b   : > { %p2054_p12 = por %p2053_p9, %p2052_p1 }
  0x7d   : > { %p2055_p2 = pnand %p2054_p12, %p2048_p13 }
  0x7f   : > { %2058 = shalt.err (!%p2055_p2)
}
  0x80   : > { %1785 = dma.hbm_to_vmem [thread:$0]  (!%p2819_p5), %s2764_s6, 16, %s406_s5, [#allocation13]  }
  0x81   : > { %s2261_s28 = smov [#allocation17]   ;;  %s2262_s13 = smov [#allocation18]  }
  0x82   : > { %s429_s23 = sshll.u32 %s2261_s28, 4  ;;  %s443_s17 = sshll.u32 %s2262_s13, 4  ;;  %s430_s23 = int_to_ptr.vmem [resolvable:$true] %s429_s23  ;;  %s444_s17 = int_to_ptr.vmem [resolvable:$true] %s443_s17 }
  0x83   : > { %s2070_s9 = scalar_lea.vmem %s430_s23, 16  ;;  %s2077_s11 = scalar_lea.vmem %s430_s23, 32 }
  0x84   : > { %p2071_p0 = scmp.ne.s32.totalorder %s430_s23, %s2070_s9  ;;  %p2078_p12 = scmp.lt.s32.totalorder %s430_s23, %s430_s23 }
  0x85   : > { %p2079_p8 = scmp.lt.s32.totalorder %s2077_s11, %s2070_s9 }
  0x86   : > { %p2073_p6 = pnand %p2071_p0, %p2818_p3 }
  0x87   : > { %p2080_p10 = por %p2079_p8, %p2078_p12 }
  0x88   : > { %p2074_p7 = pneg %p2073_p6 }
  0x8a   : > { %p2081_p4 = pnand %p2080_p10, %p2074_p7 }
  0x8c   : > { %2084 = shalt.err (!%p2081_p4)
}
  0x8d   : > { %1791 = dma.hbm_to_vmem [thread:$0]  (!%p2819_p5), %s2766_s8, 16, %s430_s23, [#allocation16]  }
  0x8e   : > { %s2096_s12 = scalar_lea.vmem %s444_s17, 64  ;;  %p2104_p2 = scmp.lt.s32.totalorder %s444_s17, %s444_s17 }
  0x8f   : > { %p2097_p13 = scmp.ne.s32.totalorder %s444_s17, %s2096_s12  ;;  %p2105_p0 = scmp.lt.s32.totalorder %s2096_s12, %s2096_s12 }
  0x91   : > { %p2099_p1 = pnand %p2097_p13, %p2818_p3  ;;  %p2106_p6 = por %p2105_p0, %p2104_p2 }
  0x93   : > { %p2100_p9 = pneg %p2099_p1 }
  0x95   : > { %p2107_p11 = pnand %p2106_p6, %p2100_p9 }
  0x97   : > { %2110 = shalt.err (!%p2107_p11)
}
  0x98   : > { %1794 = dma.hbm_to_vmem [thread:$0]  (!%p2819_p5), %s2768_s10, 64, %s444_s17, [#allocation19]  }
  0x99   : > { %s2534_s28 = scalar_lea.hbm %s2758_s0, %s2463_s19  ;;  %s464_s23 = scalar_lea.vmem [#allocation3], %s2460_s29 }
  0x9a   : > { %s471_s13 = sshll.u32 %s464_s23, 4  ;;  %s2541_s11 = scalar_lea.hbm %s2760_s2, %s2463_s19  ;;  %s472_s13 = int_to_ptr.vmem [resolvable:$true] %s471_s13 }
  0x9b   : > { %s2820_s7 = sand.u32 1, %s2247_s27   ;;  %s2111_s12 = scalar_lea.hbm %s2534_s28, 64 }
  0x9c   : > { %s461_s5 = scalar_lea.sflag [#allocation4], %s2820_s7  ;;  %p2112_p11 = scmp.ne.s32.totalorder %s2534_s28, %s2111_s12 }
  0x9d   : > { %p2821_p3 = scmp.ne.s32.totalorder %s2817_s25, 0  ;;  %s2116_s24 = scalar_lea.hbm %s2758_s0, 128 }
  0x9e   : > { %p2117_p12 = scmp.lt.s32.totalorder %s2534_s28, %s2758_s0  ;;  %p2118_p8 = scmp.lt.s32.totalorder %s2116_s24, %s2111_s12 }
  0x9f   : > { %p2114_p5 = pnand %p2112_p11, %p2821_p3 }
  0xa0   : > { %p2119_p10 = por %p2118_p8, %p2117_p12 }
  0xa1   : > { %p2115_p7 = pneg %p2114_p5 }
  0xa3   : > { %p2120_p4 = pnand %p2119_p10, %p2115_p7 }
  0xa5   : > { %2123 = shalt.err (!%p2120_p4)
}
  0xa6   : > { %s2124_s19 = scalar_lea.vmem %s472_s13, 64  ;;  %s2263_s23 = smov [#allocation3]  }
  0xa7   : > { %p2125_p13 = scmp.ne.s32.totalorder %s472_s13, %s2124_s19  ;;  %s2129_s18 = sshll.u32 %s2263_s23, 4  ;;  %s2130_s18 = int_to_ptr.vmem [resolvable:$false] %s2129_s18 }
  0xa8   : > { %s2131_s9 = scalar_lea.vmem %s2130_s18, 128  ;;  %p2132_p2 = scmp.lt.s32.totalorder %s472_s13, %s2130_s18 }
  0xa9   : > { %p2127_p1 = pnand %p2125_p13, %p2821_p3  ;;  %p2133_p0 = scmp.lt.s32.totalorder %s2131_s9, %s2124_s19 }
  0xab   : > { %p2128_p9 = pneg %p2127_p1  ;;  %p2134_p6 = por %p2133_p0, %p2132_p2 }
  0xad   : > { %p2135_p11 = pnand %p2134_p6, %p2128_p9 }
  0xaf   : > { %2138 = shalt.err (!%p2135_p11)
}
  0xb0   : > { %p2822_p5 = scmp.ne.s32.totalorder %s2816_s22, 0  ;;  %s500_s7 = scalar_lea.vmem [#allocation8], %s2460_s29 }
  0xb1   : > { %s507_s12 = sshll.u32 %s500_s7, 4  ;;  %s2139_s17 = scalar_lea.hbm %s2541_s11, 64  ;;  %s508_s12 = int_to_ptr.vmem [resolvable:$true] %s507_s12 }
  0xb2   : > { %1798 = dma.hbm_to_vmem [thread:$0]  (!%p2822_p5), %s2534_s28, 64, %s472_s13, %s461_s5  }
  0xb3   : > { %p2140_p7 = scmp.ne.s32.totalorder %s2541_s11, %s2139_s17  ;;  %s2144_s3 = scalar_lea.hbm %s2760_s2, 128 }
  0xb4   : > { %p2145_p10 = scmp.lt.s32.totalorder %s2541_s11, %s2760_s2  ;;  %p2146_p4 = scmp.lt.s32.totalorder %s2144_s3, %s2139_s17 }
  0xb5   : > { %p2142_p12 = pnand %p2140_p7, %p2821_p3 }
  0xb6   : > { %p2147_p13 = por %p2146_p4, %p2145_p10 }
  0xb7   : > { %p2143_p8 = pneg %p2142_p12 }
  0xb9   : > { %p2148_p1 = pnand %p2147_p13, %p2143_p8 }
  0xbb   : > { %2151 = shalt.err (!%p2148_p1)
}
  0xbc   : > { %s2152_s29 = scalar_lea.vmem %s508_s12, 64  ;;  %s2264_s28 = smov [#allocation8]  }
  0xbd   : > { %p2153_p9 = scmp.ne.s32.totalorder %s508_s12, %s2152_s29  ;;  %s2157_s13 = sshll.u32 %s2264_s28, 4  ;;  %s2158_s13 = int_to_ptr.vmem [resolvable:$false] %s2157_s13 }
  0xbe   : > { %s2159_s5 = scalar_lea.vmem %s2158_s13, 128  ;;  %p2160_p6 = scmp.lt.s32.totalorder %s508_s12, %s2158_s13 }
  0xbf   : > { %p2155_p2 = pnand %p2153_p9, %p2821_p3  ;;  %p2161_p11 = scmp.lt.s32.totalorder %s2159_s5, %s2152_s29 }
  0xc1   : > { %p2156_p0 = pneg %p2155_p2  ;;  %p2162_p7 = por %p2161_p11, %p2160_p6 }
  0xc3   : > { %p2163_p12 = pnand %p2162_p7, %p2156_p0 }
  0xc5   : > { %2166 = shalt.err (!%p2163_p12)
}
  0xc6   : > { %1804 = dma.hbm_to_vmem [thread:$0]  (!%p2822_p5), %s2541_s11, 64, %s508_s12, %s2477_s16  }
  0xc7   : > { %p2823_p8 = scmp.ne.s32.totalorder %s2803_s15, 0 }
  0xc8   : > { %s2582_s25 = sand.u32 (!%p2823_p8), 1, %s2243_s26   ;;  %p2824_p3 = scmp.ne.s32.totalorder (!%p2823_p8), %s2811_s20, 0 }
  0xc9   : > { %516 = sbr.rel (%p2823_p8) target bundleno = 1760 (0x6e0), region = 72  ;;  %s2585_s23 = sshll.u32 (!%p2823_p8), %s2582_s25, 2 }
  0xca   : > { %s519_s18 = scalar_lea.sflag (!%p2823_p8), [#allocation4], %s2582_s25  ;;  %s522_s9 = scalar_lea.vmem (!%p2823_p8), [#allocation3], %s2585_s23 }
  0xce   : > { %2210 = dma.done.wait (%p2824_p3), %s519_s18, 64  }
  0xcf   : > { %2212 = vsyncadd (%p2824_p3), %s519_s18, 4294967232  ;;  %s527_s15 = sand.u32 1, %s2367_s14   ;;  %s531_s22 = scalar_lea.vmem [#allocation6], %s2585_s23 }
  0xd0   : > { %s528_s16 = scalar_lea.sflag [#allocation7], %s527_s15 }
  0xd1   : > { %2214 = dma.done.wait (%p2824_p3), %s528_s16, 128  }
  0xd2   : > { %2216 = vsyncadd (%p2824_p3), %s528_s16, 4294967168  ;;  %s540_s11 = scalar_lea.vmem [#allocation8], %s2585_s23  ;;  %p2825_p5 = scmp.eq.s32.totalorder %s2367_s14, 0 }
  0xd4   : > { %2218 = dma.done.wait (%p2825_p5), [#allocation10], 272   ;;  %p2826_p10 = pmov %p2825_p5 }
  0xd5   : > { %p2827_p4 = pmov %p2825_p5 }
  0xd6   : > { %2220 = vsyncadd (%p2826_p10), [#allocation10], 4294967024 }
  0xd7   : > { %2222 = dma.done.wait (%p2827_p4), [#allocation13], 272   ;;  %p2828_p13 = pmov %p2827_p4 }
  0xd8   : > { %p2829_p1 = pmov %p2827_p4 }
  0xd9   : > { %2224 = vsyncadd (%p2828_p13), [#allocation13], 4294967024 }
  0xda   : > { %2226 = dma.done.wait (%p2829_p1), [#allocation16], 272   ;;  %p2830_p9 = pmov %p2829_p1 }
  0xdb   : > { %p2831_p2 = pmov %p2829_p1 }
  0xdc   : > { %2228 = vsyncadd (%p2830_p9), [#allocation16], 4294967024 }
  0xdd   : > { %2230 = dma.done.wait (%p2831_p2), [#allocation19], 64   ;;  %p2832_p0 = pmov %p2829_p1 }
  0xde   : > { %v2265_v0 = vmov 0.0   ;;  %vm2266_vm0 = vmmov 0   ;;  %v1876_v1 = vld [vmem:[#allocation9 + $0x8] sm:$0xff]   ;;  %v1877_v2 = vld [vmem:[#allocation12 + $0x8] sm:$0xff]   ;;  %v1879_v4 = vld [vmem:[#allocation12] sm:$0xff]   ;;  %vm650_vm1 = vcmask 261120  }
  0xdf   : > { %2232 = vsyncadd (%p2832_p0), [#allocation19], 4294967232  ;;  %1657 = vmatprep.subr.bf16.mxu0 %v2265_v0  ;;  %1665 = vmatprep.subr.bf16.mxu1 %v2265_v0  ;;  %v1878_v3 = vld [vmem:[#allocation9] sm:$0xff]   ;;  %v622_v5 = vld [vmem:[%s522_s9] sm:$0xf]  ;;  %s2267_s20 = smov 32  }
  0xe0   : > { %1661 = vmatprep.mubr.msk.bf16.mxu0 %vm2266_vm0, %v2265_v0  ;;  %1669 = vmatprep.mubr.msk.bf16.mxu1 %vm2266_vm0, %v2265_v0  ;;  %v623_v6 = vld [vmem:[%s531_s22] sm:$0xf]  ;;  %v1604_v9 = vld [vmem:[#allocation14] ss:$0 sm:$0xff]  ;;  %s2268_s7 = smov 96   ;;  %s2833_s30 = sld [smem:[#allocation37_spill]] }
  0xe1   : > { %1658 = vmatpush3.bf16.msra.mxu0 %v1876_v1  ;;  %1666 = vmatpush3.bf16.msra.mxu1 %v1877_v2  ;;  %v1880_v7 = vld [vmem:[#allocation18] ss:$0 sps:$4 sm:$0xff]   ;;  %v1600_v8 = vld [vmem:[#allocation11] ss:$0 sm:$0xff]  ;;  %vm849_vm2 = vcmask 64512   ;;  %s2269_s24 = smov 120  }
  0xe2   : > { %1659 = vmatprep.subr.bf16.mxu0 %v2265_v0  ;;  %1667 = vmatprep.subr.bf16.mxu1 %v2265_v0  ;;  %s2270_s3 = smov 112   ;;  %s2271_s21 = smov 104   ;;  %v1881_v33 = vld [vmem:[#allocation15 + $0x8] sm:$0xff]   ;;  %v1882_v34 = vld [vmem:[#allocation15] sm:$0xff]   ;;  %v624_v35 = vld [vmem:[%s540_s11] sm:$0xf] }
  0xe3   : > { %831 = vrot.lane.b32.xlu0 %v1880_v7, %s2267_s20  ;;  %vm911_vm3 = vcmask 1043456   ;;  %s2272_s19 = smov 8   ;;  %s2273_s29 = smov 16   ;;  %vm1073_vm4 = vcmask 130112   ;;  %vm1189_vm5 = vcmask 195712   ;;  %vm1305_vm6 = vcmask 261312  }
  0xe4   : > { %s2834_s5 = sld [smem:[#allocation38_spill]]  ;;  %s2274_s15 = smov 24   ;;  %vm1376_vm7 = vcmask 257024  }
  0xe5   : > { %1660 = vmatpush3.bf16.msra.mxu0 %v1878_v3  ;;  %1668 = vmatpush3.bf16.msra.mxu1 %v1879_v4  ;;  %s2835_s11 = sld [smem:[#allocation39_spill]]  ;;  %s620_s12 = scalar_lea.vmem [#allocation20], %s2585_s23 }
  0xe6   : > { %1681 = vmatprep.subr.bf16.mxu1 %v2265_v0  ;;  %1673 = vmatprep.subr.bf16.mxu0 %v2265_v0  ;;  %v625_v25 = vld [vmem:[%s2833_s30] sm:$0xf]  ;;  %s2836_s20 = sld [smem:[#allocation32_spill]]  ;;  %s1392_s17 = sshll.u32 %s620_s12, 4  ;;  %s2717_s17 = int_to_ptr.vmem [resolvable:$true] %s1392_s17 }
  0xe7   : > { %s2167_s23 = scalar_lea.vmem %s2717_s17, 64 }
  0xe8   : > { %1662 = vmatmul.mubr.msk.bf16.vlgmr.msra.gmra.mxu0 %vm650_vm1, %v622_v5  ;;  %1670 = vmatmul.mubr.msk.bf16.vlgmr.msra.gmra.mxu1 %vm650_vm1, %v623_v6  ;;  %p2168_p6 = scmp.ne.s32.totalorder %s2717_s17, %s2167_s23 }
  0xe9   : > { %1677 = vmatprep.mubr.msk.bf16.mxu0 %vm2266_vm0, %v2265_v0  ;;  %1683 = vmatprep.mubr.msk.bf16.mxu1 %vm2266_vm0, %v2265_v0 }
  0xea   : > { %1674 = vmatpush3.bf16.msra.mxu0 %v1881_v33 }
  0xeb   : > { %1675 = vmatprep.subr.bf16.mxu0 %v2265_v0 }
  0xec   : > { %p2838_p11 = scmp.ne.s32.totalorder %s2836_s20, 0 }
  0xee   : > { %1676 = vmatpush3.bf16.msra.mxu0 %v1882_v34  ;;  %p2169_p7 = pnand %p2168_p6, %p2838_p11 }
  0xef   : > { %1687 = vmatprep.subr.bf16.mxu0 %v2265_v0 }
  0xf0   : > { %p2170_p12 = pneg %p2169_p7 }
  0xf1   : > { %1678 = vmatmul.mubr.msk.bf16.vlgmr.msra.gmra.mxu0 %vm650_vm1, %v624_v35 }
  0xf2   : > { %1689 = vmatprep.mubr.msk.bf16.mxu0 %vm2266_vm0, %v2265_v0 }
 0x155   : > { %v832_v14 = vpop.permute.xlu0 %831 }
 0x1a8   : > { %v688_v10 = vpop.f32.mrf.mxu0  ;;  %v754_v12 = vpop.f32.mrf.mxu1 }
 0x1a9   : > { %v689_v11 = vadd.f32 %v1600_v8, %v688_v10  ;;  %v755_v13 = vadd.f32 %v1604_v9, %v754_v12  ;;  %v1608_v8 = vld [vmem:[#allocation17] ss:$0 sm:$0xff] }
 0x1aa   : > { %v1663_v15 = vpop.f32.mrf.mxu0  ;;  %v1671_v17 = vpop.f32.mrf.mxu1 }
 0x1ab   : > { %v826_v16 = vpack.c.bf16 %v689_v11, %v689_v11  ;;  %v840_v18 = vpack.c.bf16 %v755_v13, %v755_v13 }
 0x1ac   : > { %v691_v19 = vpop.f32.mrf.mxu0  ;;  %v757_v20 = vpop.f32.mrf.mxu1 }
 0x1ad   : > { %v834_v21 = vmul.bf16 %v832_v14, %v826_v16  ;;  %v842_v22 = vmul.bf16 %v840_v18, %v832_v14  ;;  %v827_v26 = vmul.bf16 %v826_v16, %v625_v25  ;;  %v841_v27 = vmul.bf16 %v840_v18, %v625_v25 }
 0x1ae   : > { %v1664_v23 = vpop.f32.mrf.mxu0  ;;  %v1672_v24 = vpop.f32.mrf.mxu1 }
 0x1af   : > { %836 = vrot.lane.b32.xlu1 %v834_v21, %s2268_s7  ;;  %844 = vrot.lane.b32.xlu0 %v842_v22, %s2268_s7  ;;  %s1626_s7 = sshll.u32 %s2367_s14, 6  ;;  %s1379_s14 = scalar_lea.sflag [#allocation5], %s2582_s25 }
 0x1b1   : > { %v820_v5 = vpop.f32.mrf.mxu0 }
 0x1b2   : > { %v821_v10 = vadd.f32 %v1608_v8, %v820_v5 }
 0x1b3   : > { %v1679_v6 = vpop.f32.mrf.mxu0 }
 0x1b4   : > { %v848_v13 = vpack.c.bf16 %v821_v10, %v821_v10 }
 0x1b5   : > { %v823_v7 = vpop.f32.mrf.mxu0 }
 0x1b6   : > { %v913_v14 = vsel %vm911_vm3, %v848_v13, 0 }
 0x1b7   : > { %v1680_v9 = vpop.f32.mrf.mxu0  ;;  %1688 = vmatpush3.bf16.msra.mxu0 %v913_v14 }
 0x1b8   : > { %1699 = vmatprep.subr.bf16.mxu0 %v2265_v0 }
 0x221   : > { %v837_v28 = vpop.permute.xlu1 %836  ;;  %v845_v29 = vpop.permute.xlu0 %844 }
 0x222   : > { %v839_v30 = vadd.bf16 %v837_v28, %v827_v26  ;;  %v847_v31 = vadd.bf16 %v845_v29, %v841_v27 }
 0x224   : > { %957 = vrot.lane.b32.xlu0 %v839_v30, %s2269_s24  ;;  %960 = vrot.lane.b32.xlu1 %v847_v31, %s2269_s24  ;;  %v854_v32 = vsel %vm849_vm2, %v847_v31, 0 }
 0x225   : > { %1682 = vmatpush3.bf16.xpose.msra.mxu1 %v854_v32 }
 0x226   : > { %1693 = vmatprep.subr.bf16.mxu1 %v2265_v0 }
 0x228   : > { %1075 = vrot.lane.b32.xlu0 %v839_v30, %s2270_s3  ;;  %1077 = vrot.lane.b32.xlu1 %v847_v31, %s2270_s3 }
 0x22c   : > { %1191 = vrot.lane.b32.xlu0 %v839_v30, %s2271_s21  ;;  %1193 = vrot.lane.b32.xlu1 %v847_v31, %s2271_s21 }
 0x22d   : > { %1684 = vmatmul.mubr.msk.bf16.vlgmr.msra.gmra.mxu1 %vm849_vm2, %v839_v30 }
 0x22e   : > { %1695 = vmatprep.mubr.msk.bf16.mxu1 %vm2266_vm0, %v2265_v0 }
 0x296   : > { %v961_v36 = vpop.permute.xlu1 %960  ;;  %v958_v39 = vpop.permute.xlu0 %957 }
 0x297   : > { %v966_v37 = vsel %vm849_vm2, %v961_v36, 0 }
 0x298   : > { %1694 = vmatpush3.bf16.xpose.msra.mxu1 %v966_v37 }
 0x299   : > { %1705 = vmatprep.subr.bf16.mxu1 %v2265_v0 }
 0x29a   : > { %v1078_v38 = vpop.permute.xlu1 %1077  ;;  %v1076_v42 = vpop.permute.xlu0 %1075 }
 0x29b   : > { %v1083_v40 = vsel %vm849_vm2, %v1078_v38, 0 }
 0x29e   : > { %v1194_v41 = vpop.permute.xlu1 %1193  ;;  %v1192_v44 = vpop.permute.xlu0 %1191 }
 0x29f   : > { %1696 = vmatmul.mubr.msk.bf16.vlgmr.msra.gmra.mxu1 %vm849_vm2, %v958_v39  ;;  %v1199_v43 = vsel %vm849_vm2, %v1194_v41, 0 }
 0x2a0   : > { %1706 = vmatpush3.bf16.xpose.msra.mxu1 %v1083_v40  ;;  %1707 = vmatprep.mubr.msk.bf16.mxu1 %vm2266_vm0, %v2265_v0 }
 0x2a1   : > { %1717 = vmatprep.subr.bf16.mxu1 %v2265_v0 }
 0x2a7   : > { %1708 = vmatmul.mubr.msk.bf16.vlgmr.msra.gmra.mxu1 %vm849_vm2, %v1076_v42 }
 0x2a8   : > { %1718 = vmatpush3.bf16.xpose.msra.mxu1 %v1199_v43  ;;  %1719 = vmatprep.mubr.msk.bf16.mxu1 %vm2266_vm0, %v2265_v0 }
 0x2a9   : > { %1729 = vmatprep.subr.bf16.mxu1 %v2265_v0 }
 0x2af   : > { %1720 = vmatmul.mubr.msk.bf16.vlgmr.msra.gmra.mxu1 %vm849_vm2, %v1192_v44 }
 0x2b0   : > { %1733 = vmatprep.mubr.msk.bf16.mxu1 %vm2266_vm0, %v2265_v0 }
 0x2ed   : > { %v890_v45 = vpop.f32.mrf.mxu1 }
 0x2ee   : > { %v896_v46 = vsel %vm849_vm2, %v890_v45, -inf }
 0x2ef   : > { %897 = vmax.xlane.f32.xlu1 %v896_v46  ;;  %v1685_v47 = vpop.f32.mrf.mxu1 }
 0x2f1   : > { %v893_v48 = vpop.f32.mrf.mxu1 }
 0x2f3   : > { %v1686_v49 = vpop.f32.mrf.mxu1 }
 0x35f   : > { %v1002_v50 = vpop.f32.mrf.mxu1 }
 0x360   : > { %v1008_v51 = vsel %vm849_vm2, %v1002_v50, -inf }
 0x361   : > { %1009 = vmax.xlane.f32.xlu0 %v1008_v51  ;;  %v1697_v52 = vpop.f32.mrf.mxu1 }
 0x363   : > { %v1005_v53 = vpop.f32.mrf.mxu1 }
 0x365   : > { %v1698_v54 = vpop.f32.mrf.mxu1 }
 0x367   : > { %v1119_v55 = vpop.f32.mrf.mxu1 }
 0x368   : > { %v1125_v56 = vsel %vm849_vm2, %v1119_v55, -inf }
 0x369   : > { %1126 = vmax.xlane.f32.xlu0 %v1125_v56  ;;  %v1709_v57 = vpop.f32.mrf.mxu1 }
 0x36b   : > { %v1122_v58 = vpop.f32.mrf.mxu1 }
 0x36d   : > { %v1710_v59 = vpop.f32.mrf.mxu1 }
 0x36f   : > { %v1235_v60 = vpop.f32.mrf.mxu1 }
 0x370   : > { %v1241_v61 = vsel %vm849_vm2, %v1235_v60, -inf }
 0x371   : > { %1242 = vmax.xlane.f32.xlu1 %v1241_v61  ;;  %v1721_v62 = vpop.f32.mrf.mxu1 }
 0x373   : > { %v1238_v63 = vpop.f32.mrf.mxu1 }
 0x375   : > { %v1722_v1 = vpop.f32.mrf.mxu1 }
 0x376   : > { %v1883_v1 = vld [vmem:[%s2834_s5 + $0x8] sm:$0xff]  }
 0x377   : > { %1730 = vmatpush3.bf16.msra.mxu1 %v1883_v1 }
 0x378   : > { %v898_v2 = vpop.xlane.xlu1 %897  ;;  %1731 = vmatprep.subr.bf16.mxu1 %v2265_v0 }
 0x379   : > { %v899_v3 = vsub.f32 %v890_v45, %v898_v2  ;;  %v1884_v2 = vld [vmem:[%s2834_s5] sm:$0xff]  }
 0x37b   : > { %v900_v4 = vmul.f32 1.442695, %v899_v3  ;;  %1732 = vmatpush3.bf16.msra.mxu1 %v1884_v2 }
 0x37d   : > { %1885 = vpow2.f32 %v900_v4 }
 0x38a   : > { %v1886_v11 = vpop.eup %1885 }
 0x38b   : > { %v902_v12 = vsel %vm849_vm2, %v1886_v11, 0.0 }
 0x38c   : > { %903 = vadd.xlane.f32.xlu0 %v902_v12 }
 0x3ea   : > { %v1010_v15 = vpop.xlane.xlu0 %1009 }
 0x3eb   : > { %v1011_v16 = vsub.f32 %v1002_v50, %v1010_v15 }
 0x3ed   : > { %v1012_v17 = vmul.f32 1.442695, %v1011_v16 }
 0x3ef   : > { %1887 = vpow2.f32 %v1012_v17 }
 0x3f2   : > { %v1127_v18 = vpop.xlane.xlu0 %1126 }
 0x3f3   : > { %v1128_v19 = vsub.f32 %v1119_v55, %v1127_v18 }
 0x3f5   : > { %v1129_v20 = vmul.f32 1.442695, %v1128_v19 }
 0x3f7   : > { %1889 = vpow2.f32 %v1129_v20 }
 0x3fa   : > { %v1243_v26 = vpop.xlane.xlu1 %1242 }
 0x3fb   : > { %v1244_v27 = vsub.f32 %v1235_v60, %v1243_v26 }
 0x3fc   : > { %v1888_v21 = vpop.eup %1887 }
 0x3fd   : > { %v1014_v22 = vsel %vm849_vm2, %v1888_v21, 0.0  ;;  %v1245_v28 = vmul.f32 1.442695, %v1244_v27 }
 0x3fe   : > { %1015 = vadd.xlane.f32.xlu1 %v1014_v22 }
 0x404   : > { %v1890_v23 = vpop.eup %1889 }
 0x405   : > { %v1131_v24 = vsel %vm849_vm2, %v1890_v23, 0.0 }
 0x406   : > { %1132 = vadd.xlane.f32.xlu0 %v1131_v24 }
 0x40f   : > { %1137 = vrot.lane.b32.xlu1 %v848_v13, %s2270_s3  ;;  %s2837_s3 = sld [smem:[#allocation40_spill]] }
 0x415   : > { %v904_v25 = vpop.xlane.xlu0 %903 }
 0x416   : > { %1891 = vrcp.f32 %v904_v25 }
 0x417   : > { %1893 = vpow2.f32 %v1245_v28 }
 0x41c   : > { %1021 = vrot.lane.b32.xlu0 %v848_v13, %s2269_s24 }
 0x423   : > { %v1892_v29 = vpop.eup %1891 }
 0x424   : > { %v906_v30 = vmul.f32 %v1892_v29, %v1886_v11  ;;  %v1894_v32 = vpop.eup %1893  ;;  %v1621_v11 = vld [vmem:[%s2835_s11] ss:$0 sm:$0xff] }
 0x425   : > { %v1247_v33 = vsel %vm849_vm2, %v1894_v32, 0.0 }
 0x426   : > { %v907_v31 = vpack.c.bf16 %v906_v30, %v906_v30 }
 0x428   : > { %1690 = vmatmul.mubr.msk.bf16.vlgmr.msra.gmra.mxu0 %vm849_vm2, %v907_v31 }
 0x429   : > { %1701 = vmatprep.mubr.msk.bf16.mxu0 %vm2266_vm0, %v2265_v0 }
 0x433   : > { %1248 = vadd.xlane.f32.xlu1 %v1247_v33 }
 0x444   : > { %1253 = vrot.lane.b32.xlu1 %v848_v13, %s2271_s21  ;;  %s2715_s21 = scalar_lea.hbm %s2837_s3, %s1626_s7 }
 0x487   : > { %v1016_v34 = vpop.xlane.xlu1 %1015 }
 0x488   : > { %1895 = vrcp.f32 %v1016_v34 }
 0x48b   : > { %v1138_v40 = vpop.permute.xlu1 %1137 }
 0x48c   : > { %v1143_v42 = vsel %vm911_vm3, %v1138_v40, 0 }
 0x48f   : > { %v1133_v35 = vpop.xlane.xlu0 %1132 }
 0x490   : > { %1897 = vrcp.f32 %v1133_v35 }
 0x493   : > { %v1022_v36 = vpop.permute.xlu0 %1021 }
 0x494   : > { %v1027_v37 = vsel %vm911_vm3, %v1022_v36, 0 }
 0x495   : > { %v1896_v38 = vpop.eup %1895  ;;  %1700 = vmatpush3.bf16.msra.mxu0 %v1027_v37 }
 0x496   : > { %1711 = vmatprep.subr.bf16.mxu0 %v2265_v0  ;;  %v1018_v39 = vmul.f32 %v1896_v38, %v1888_v21 }
 0x498   : > { %v1019_v41 = vpack.c.bf16 %v1018_v39, %v1018_v39 }
 0x49a   : > { %1702 = vmatmul.mubr.msk.bf16.vlgmr.msra.gmra.mxu0 %vm849_vm2, %v1019_v41 }
 0x49b   : > { %1712 = vmatpush3.bf16.msra.mxu0 %v1143_v42  ;;  %1713 = vmatprep.mubr.msk.bf16.mxu0 %vm2266_vm0, %v2265_v0 }
 0x49c   : > { %1723 = vmatprep.subr.bf16.mxu0 %v2265_v0 }
 0x49d   : > { %v1898_v43 = vpop.eup %1897 }
 0x49e   : > { %v1135_v44 = vmul.f32 %v1898_v43, %v1890_v23 }
 0x4a0   : > { %v1136_v45 = vpack.c.bf16 %v1135_v44, %v1135_v44 }
 0x4a2   : > { %1714 = vmatmul.mubr.msk.bf16.vlgmr.msra.gmra.mxu0 %vm849_vm2, %v1136_v45 }
 0x4a3   : > { %1725 = vmatprep.mubr.msk.bf16.mxu0 %vm2266_vm0, %v2265_v0 }
 0x4bc   : > { %v1249_v46 = vpop.xlane.xlu1 %1248 }
 0x4bd   : > { %1899 = vrcp.f32 %v1249_v46 }
 0x4c0   : > { %v1254_v47 = vpop.permute.xlu1 %1253 }
 0x4c1   : > { %v1259_v48 = vsel %vm911_vm3, %v1254_v47, 0 }
 0x4c2   : > { %1724 = vmatpush3.bf16.msra.mxu0 %v1259_v48 }
 0x4ca   : > { %v1900_v49 = vpop.eup %1899 }
 0x4cb   : > { %v1251_v50 = vmul.f32 %v1900_v49, %v1894_v32 }
 0x4cd   : > { %v1252_v51 = vpack.c.bf16 %v1251_v50, %v1251_v50 }
 0x4cf   : > { %1726 = vmatmul.mubr.msk.bf16.vlgmr.msra.gmra.mxu0 %vm849_vm2, %v1252_v51 }
 0x4e8   : > { %v949_v52 = vpop.f32.mrf.mxu0 }
 0x4e9   : > { %955 = vst.msk [vmem:[#allocation2] sm:$0xff] %vm849_vm2, %v949_v52 }
 0x4ea   : > { %v1691_v53 = vpop.f32.mrf.mxu0 }
 0x4ec   : > { %v952_v54 = vpop.f32.mrf.mxu0 }
 0x4ee   : > { %v1692_v55 = vpop.f32.mrf.mxu0 }
 0x55a   : > { %v1063_v56 = vpop.f32.mrf.mxu0 }
 0x55b   : > { %1070 = vrot.lane.b32.xlu0 %v1063_v56, %s2272_s19  ;;  %s2275_s19 = smov [#allocation20]  }
 0x55c   : > { %v1703_v57 = vpop.f32.mrf.mxu0 }
 0x55e   : > { %v1066_v58 = vpop.f32.mrf.mxu0 }
 0x560   : > { %v1704_v59 = vpop.f32.mrf.mxu0 }
 0x562   : > { %v1179_v60 = vpop.f32.mrf.mxu0 }
 0x563   : > { %1186 = vrot.lane.b32.xlu1 %v1179_v60, %s2273_s29  ;;  %s2171_s29 = sshll.u32 %s2275_s19, 4  ;;  %s2172_s29 = int_to_ptr.vmem [resolvable:$false] %s2171_s29 }
 0x564   : > { %v1715_v61 = vpop.f32.mrf.mxu0  ;;  %s2173_s28 = scalar_lea.vmem %s2172_s29, 128  ;;  %p2174_p8 = scmp.lt.s32.totalorder %s2717_s17, %s2172_s29 }
 0x565   : > { %p2175_p3 = scmp.lt.s32.totalorder %s2173_s28, %s2167_s23 }
 0x566   : > { %v1182_v62 = vpop.f32.mrf.mxu0 }
 0x567   : > { %p2176_p5 = por %p2175_p3, %p2174_p8 }
 0x568   : > { %v1716_v63 = vpop.f32.mrf.mxu0 }
 0x569   : > { %p2177_p10 = pnand %p2176_p5, %p2170_p12 }
 0x58f   : > { %v1295_v3 = vpop.f32.mrf.mxu0 }
 0x590   : > { %1302 = vrot.lane.b32.xlu0 %v1295_v3, %s2274_s15 }
 0x591   : > { %v1727_v4 = vpop.f32.mrf.mxu0 }
 0x593   : > { %v1298_v5 = vpop.f32.mrf.mxu0 }
 0x595   : > { %v1728_v6 = vpop.f32.mrf.mxu0 }
 0x5cd   : > { %v1071_v7 = vpop.permute.xlu0 %1070 }
 0x5ce   : > { %1074 = vst.msk [vmem:[#allocation2] sm:$0xff] %vm1073_vm4, %v1071_v7 }
 0x5d5   : > { %v1187_v8 = vpop.permute.xlu1 %1186 }
 0x5d6   : > { %1190 = vst.msk [vmem:[#allocation2] sm:$0xff] %vm1189_vm5, %v1187_v8 }
 0x602   : > { %v1303_v9 = vpop.permute.xlu0 %1302 }
 0x603   : > { %1306 = vst.msk [vmem:[#allocation2] sm:$0xff] %vm1305_vm6, %v1303_v9 }
 0x60a   : > { %v1307_v10 = vld [vmem:[#allocation2] sm:$0xff] }
 0x60b   : > { %v1308_v0 = vpack.c.bf16 %v1307_v10, %v1307_v10 }
 0x60d   : > { %1734 = vmatmul.mubr.msk.bf16.vlgmr.msra.gmra.mxu1 %vm650_vm1, %v1308_v0 }
 0x6cd   : > { %v1369_v12 = vpop.f32.mrf.mxu1 }
 0x6ce   : > { %v1370_v13 = vadd.f32 %v1621_v11, %v1369_v12 }
 0x6cf   : > { %v1735_v14 = vpop.f32.mrf.mxu1 }
 0x6d0   : > { %v1375_v15 = vpack.c.bf16 %v1370_v13, %v1370_v13 }
 0x6d1   : > { %v1372_v16 = vpop.f32.mrf.mxu1 }
 0x6d2   : > { %1377 = vst.msk [vmem:[%s620_s12] sm:$0xf] %vm1376_vm7, %v1375_v15 }
 0x6d3   : > { %v1736_v17 = vpop.f32.mrf.mxu1 }
 0x6d4   : > { %2180 = shalt.err (!%p2177_p10)
}
 0x6d5   : > { %s2181_s13 = scalar_lea.hbm %s2715_s21, 64  ;;  %s2185_s9 = scalar_lea.hbm %s2837_s3, 128 }
 0x6d6   : > { %p2182_p4 = scmp.ne.s32.totalorder %s2715_s21, %s2181_s13  ;;  %p2186_p9 = scmp.lt.s32.totalorder %s2715_s21, %s2837_s3 }
 0x6d7   : > { %p2187_p2 = scmp.lt.s32.totalorder %s2185_s9, %s2181_s13 }
 0x6d8   : > { %p2183_p13 = pnand %p2182_p4, %p2838_p11 }
 0x6d9   : > { %p2188_p0 = por %p2187_p2, %p2186_p9 }
 0x6da   : > { %p2184_p1 = pneg %p2183_p13 }
 0x6dc   : > { %p2189_p6 = pnand %p2188_p0, %p2184_p1 }
 0x6de   : > { %2192 = shalt.err (!%p2189_p6)
}
 0x6df   : > { %1771 = dma.vmem_to_hbm [thread:$0]  (%p2838_p11), %s2717_s17, 64, %s2715_s21, %s1379_s14  }
 0x6e0 PF: > { %s2839_s22 = sld [smem:[#allocation28_spill]] }
 0x6e1   : > { %s2840_s11 = sld [smem:[#allocation33_spill]] }
 0x6e2   : > { %s2841_s7 = sld [smem:[#allocation29_spill]] }
 0x6e6   : > { %s1404_s12 = sand.u32 1, %s2839_s22  }
 0x6e7   : > { %p2842_p7 = scmp.ne.s32.totalorder %s2840_s11, 0  ;;  %s1405_s30 = scalar_lea.sflag [#allocation5], %s1404_s12 }
 0x6e8   : > { %p2843_p12 = scmp.ge.s32.totalorder %s2841_s7, 2 }
 0x6ea   : > { %p1806_p8 = pnand %p2843_p12, %p2842_p7 }
 0x6ec   : > { %p1807_p3 = pneg %p1806_p8 }
 0x6ee   : > { %2234 = dma.done.wait (%p1807_p3), %s1405_s30, 64  }
 0x6ef   : > { %2236 = vsyncadd (%p1807_p3), %s1405_s30, 4294967232  ;;  %s2844_s28 = sld [smem:[#allocation30_spill]]  ;;  %s2846_s25 = smov %s2243_s26 }
 0x6f0   : > { %s2845_s24 = sld [smem:[#allocation31_spill]]  ;;  %s2847_s26 = smov %s2247_s27 }
 0x6f5   : > { %p33_p5 = scmp.ge.s32.totalorder %s2844_s28, 4  }
 0x6f6   : > { %s2848_s27 = smov %s2845_s24 }
 0x6f7   :  { %35 = sbr.rel (!%p33_p5) target bundleno = 19 (0x13), region = 169 }
 0x6fc   :  { %1410 = vsyncpa [#allocation4], 1 }
 0x6fd   :  { %1412 = vsyncpa [#allocation4 + $0x1], 1 }
 0x6fe   :  { %1413 = vsyncpa [#allocation7], 1 }
 0x6ff   :  { %1415 = vsyncpa [#allocation7 + $0x1], 1 }
 0x700   :  { %1416 = vsyncpa [#allocation10], 1 }
 0x701   :  { %1417 = vsyncpa [#allocation13], 1 }
 0x702   :  { %1418 = vsyncpa [#allocation16], 1 }
 0x703   :  { %1419 = vsyncpa [#allocation19], 1 }
 0x704   :  { %1420 = vsyncpa [#allocation5], 1 }
 0x705   :  { %1422 = vsyncpa [#allocation5 + $0x1], 1 }

// kernel: tpu_custom_call.1
= control target key start
LH: loop header
LB: loop body
LE: loop exit
PB: predicated region body
PF: predicated region fallthrough
CT: control target
= control target key end

     0   :  { %s2758_s0 = inlined_call_operand.hbm [shape: bf16[2,8,32], index: 0, kind: input, shape index: {}]   ;;  %s2759_s1 = inlined_call_operand.hbm [shape: bf16[2,8,32], index: 1, kind: input, shape index: {}]   ;;  %s2760_s2 = inlined_call_operand.hbm [shape: bf16[2,8,32], index: 2, kind: input, shape index: {}]   ;;  %s2761_s3 = inlined_call_operand.hbm [shape: bf16[32,64], index: 3, kind: input, shape index: {}]   ;;  %s2762_s4 = inlined_call_operand.hbm [shape: f32[1,64], index: 4, kind: input, shape index: {}]   ;;  %s2763_s5 = inlined_call_operand.hbm [shape: bf16[32,64], index: 5, kind: input, shape index: {}]   ;;  %s2764_s6 = inlined_call_operand.hbm [shape: f32[1,64], index: 6, kind: input, shape index: {}]   ;;  %s2765_s7 = inlined_call_operand.hbm [shape: bf16[32,32], index: 7, kind: input, shape index: {}]   ;;  %s2766_s8 = inlined_call_operand.hbm [shape: f32[1,32], index: 8, kind: input, shape index: {}]   ;;  %s2767_s9 = inlined_call_operand.vmem [shape: bf16[8,32], index: 9, kind: input, shape index: {}]   ;;  %s2768_s10 = inlined_call_operand.hbm [shape: bf16[8,32], index: 10, kind: input, shape index: {}]   ;;  %s2769_s11 = inlined_call_operand.vmem [shape: bf16[32,32], index: 11, kind: input, shape index: {}]   ;;  %s2770_s12 = inlined_call_operand.vmem [shape: f32[1,32], index: 12, kind: input, shape index: {}]   ;;  %s2771_s13 = inlined_call_operand.hbm [shape: bf16[2,8,32], index: 13, kind: output, shape index: {}]  }
   0x1   :  { %2794 = sst [smem:[#allocation34_spill]] %s2761_s3 }
   0x2   :  { %2795 = sst [smem:[#allocation35_spill]] %s2763_s5 }
   0x3   :  { %2796 = sst [smem:[#allocation36_spill]] %s2765_s7 }
   0x4   :  { %2797 = sst [smem:[#allocation37_spill]] %s2767_s9 }
   0x5   :  { %2798 = sst [smem:[#allocation38_spill]] %s2769_s11 }
   0x6   :  { %2799 = sst [smem:[#allocation39_spill]] %s2770_s12 }
   0x7   :  { %2800 = sst [smem:[#allocation40_spill]] %s2771_s13 }
   0x8   :  { %18 = vsyncpa [#allocation4], 0 }
   0x9   :  { %20 = vsyncpa [#allocation4 + $0x1], 0 }
   0xa   :  { %21 = vsyncpa [#allocation7], 0 }
   0xb   :  { %23 = vsyncpa [#allocation7 + $0x1], 0 }
   0xc   :  { %24 = vsyncpa [#allocation10], 0 }
   0xd   :  { %25 = vsyncpa [#allocation13], 0 }
   0xe   :  { %26 = vsyncpa [#allocation16], 0 }
   0xf   :  { %27 = vsyncpa [#allocation19], 0 }
  0x10   :  { %28 = vsyncpa [#allocation5], 0 }
  0x11   :  { %30 = vsyncpa [#allocation5 + $0x1], 0  ;;  %s2346_s25 = smov 0   ;;  %s2348_s26 = smov 0  }
  0x12   :  { %s2350_s27 = smov 0   ;;  %s2352_s28 = smov 0  }
  0x13 LB: > { %2801 = sst [smem:[#allocation28_spill]] %s2239_s25  ;;  %s2253_s29 = smov [#allocation9]   ;;  %s2251_s28 = sphi %s2352_s28, %s2844_s28   ;;  %s2247_s27 = sphi %s2350_s27, %s2848_s27   ;;  %s2243_s26 = sphi %s2348_s26, %s2847_s26   ;;  %s2239_s25 = sphi %s2346_s25, %s2846_s25  }
  0x14   : > { %2802 = sst [smem:[#allocation29_spill]] %s2251_s28  ;;  %s367_s30 = sshll.u32 %s2253_s29, 4  ;;  %s368_s30 = int_to_ptr.vmem [resolvable:$true] %s367_s30 }
  0x15   : > { %s2367_s14 = sadd.s32 4294967295, %s2251_s28   ;;  %p1573_p0 = scmp.ge.s32.totalorder %s2251_s28, 1 }
  0x16   : > { %p2782_p1 = scmp.eq.s32.totalorder %s2367_s14, 0  ;;  %p355_p2 = scmp.lt.s32.totalorder %s2251_s28, 3 }
  0x17   : > { %s2254_s16 = smov [#allocation12]   ;;  %s2255_s19 = smov [#allocation15]  }
  0x18   : > { %p2372_p3 = pnand %p1573_p0, %p355_p2  ;;  %s391_s17 = sshll.u32 %s2254_s16, 4  ;;  %s2385_s17 = int_to_ptr.vmem [resolvable:$true] %s391_s17 }
  0x19   : > { %s415_s20 = sshll.u32 %s2255_s19, 4  ;;  %s1912_s22 = scalar_lea.vmem %s368_s30, 256  ;;  %s2387_s20 = int_to_ptr.vmem [resolvable:$true] %s415_s20 }
  0x1a   : > { %s2803_s15 = scalar_select %p2372_p3, 1, 0 }
  0x1b   : > { %p1773_p5 = pneg %p2372_p3  ;;  %p1913_p8 = scmp.ne.s32.totalorder %s368_s30, %s1912_s22 }
  0x1c   : > { %p1920_p11 = scmp.lt.s32.totalorder %s368_s30, %s368_s30  ;;  %p1921_p12 = scmp.lt.s32.totalorder %s1912_s22, %s1912_s22 }
  0x1d   : > { %p2381_p6 = pnand %p1773_p5, %p2782_p1 }
  0x1e   : > { %p1922_p13 = por %p1921_p12, %p1920_p11 }
  0x1f   : > { %s2804_s18 = scalar_select %p2381_p6, 1, 0 }
  0x20   : > { %p2391_p7 = pneg %p2381_p6 }
  0x22   : > { %s2805_s21 = scalar_select %p2391_p7, 1, 0 }
  0x23   : > { %p1915_p9 = pnand %p1913_p8, %p2391_p7 }
  0x25   : > { %p1916_p10 = pneg %p1915_p9 }
  0x27   : > { %p1923_p0 = pnand %p1922_p13, %p1916_p10 }
  0x29   : > { %1926 = shalt.err (!%p1923_p0)
}
  0x2a   : > { %s2256_s23 = smov 64   ;;  %s2257_s24 = smov 4  }
  0x2b   : > { %s2806_s3 = sld [smem:[#allocation34_spill]]  ;;  %s1938_s19 = scalar_lea.vmem %s2385_s17, 256 }
  0x2c   : > { %p1939_p2 = scmp.ne.s32.totalorder %s2385_s17, %s1938_s19  ;;  %p1946_p9 = scmp.lt.s32.totalorder %s2385_s17, %s2385_s17 }
  0x2d   : > { %p1947_p10 = scmp.lt.s32.totalorder %s1938_s19, %s1938_s19 }
  0x2e   : > { %p1941_p5 = pnand %p1939_p2, %p2391_p7 }
  0x2f   : > { %p1948_p11 = por %p1947_p10, %p1946_p9 }
  0x30   : > { %p1942_p8 = pneg %p1941_p5 }
  0x31   : > { %1776 = dma.hbm_to_vmem [thread:$0]  (!%p2381_p6), %s2806_s3, 256, %s368_s30, [#allocation10], %s2256_s23, %s2256_s23, %s2257_s24  }
  0x32   : > { %p1949_p12 = pnand %p1948_p11, %p1942_p8 }
  0x34   : > { %1952 = shalt.err (!%p1949_p12)
}
  0x35   : > { %s2807_s5 = sld [smem:[#allocation35_spill]]  ;;  %s1964_s30 = scalar_lea.vmem %s2387_s20, 256 }
  0x36   : > { %p1965_p13 = scmp.ne.s32.totalorder %s2387_s20, %s1964_s30  ;;  %p1972_p5 = scmp.lt.s32.totalorder %s2387_s20, %s2387_s20 }
  0x37   : > { %p1973_p8 = scmp.lt.s32.totalorder %s1964_s30, %s1964_s30 }
  0x38   : > { %p1967_p0 = pnand %p1965_p13, %p2391_p7 }
  0x39   : > { %p1974_p9 = por %p1973_p8, %p1972_p5 }
  0x3a   : > { %p1968_p2 = pneg %p1967_p0 }
  0x3b   : > { %1782 = dma.hbm_to_vmem [thread:$0]  (!%p2381_p6), %s2807_s5, 256, %s2385_s17, [#allocation13], %s2256_s23, %s2256_s23, %s2257_s24  }
  0x3c   : > { %p1975_p10 = pnand %p1974_p9, %p1968_p2 }
  0x3e   : > { %1978 = shalt.err (!%p1975_p10)
}
  0x3f   : > { %s2808_s7 = sld [smem:[#allocation36_spill]]  ;;  %s1572_s17 = sadd.s32 4294967294, %s2251_s28  }
  0x40   : > { %s2428_s16 = sadd.s32 1, %s2251_s28   ;;  %s43_s19 = sadd.s32 1, %s2247_s27 }
  0x41   : > { %2809 = sst [smem:[#allocation30_spill]] %s2428_s16  ;;  %s40_s22 = ssub.s32 %s2251_s28, %s2428_s16 }
  0x42   : > { %p50_p11 = scmp.ne.s32.totalorder %s2247_s27, %s2243_s26  ;;  %p41_p12 = scmp.eq.s32.totalorder %s40_s22, 0 }
  0x43   : > { %p51_p13 = scmp.eq.s32.totalorder %s2251_s28, 0  ;;  %p56_p0 = scmp.ne.s32.totalorder %s2243_s26, %s2239_s25 }
  0x44   : > { %p342_p2 = scmp.eq.s32.totalorder %s2367_s14, 1  ;;  %p348_p10 = scmp.eq.s32.totalorder %s1572_s17, 1 }
  0x45   : > { %1788 = dma.hbm_to_vmem [thread:$0]  (!%p2381_p6), %s2808_s7, 256, %s2387_s20, [#allocation16], %s2256_s23, %s2256_s23, %s2257_s24  }
  0x46   : > { %s2440_s30 = scalar_select %p41_p12, %s2247_s27, %s43_s19  }
  0x47   : > { %p52_p5 = por %p51_p13, %p50_p11  ;;  %p2444_p8 = por %p2782_p1, %p56_p0 }
  0x48   : > { %2810 = sst [smem:[#allocation31_spill]] %s2440_s30  ;;  %p2448_p9 = por %p342_p2, %p50_p11 }
  0x49   : > { %s2811_s20 = scalar_select %p2444_p8, 1, 0 }
  0x4a   : > { %s2812_s23 = scalar_select %p2448_p9, 1, 0 }
  0x4b   : > { %p1816_p4 = scmp.lt.s32.totalorder %s2251_s28, 2  ;;  %s2774_s24 = sand.u32 1, %s2247_s27  }
  0x4c   : > { %2813 = sst [smem:[#allocation32_spill]] %s2812_s23  ;;  %p2454_p3 = por %p348_p10, %p56_p0 }
  0x4d   : > { %s2460_s29 = sshll.u32 %s2774_s24, 2  ;;  %s2463_s19 = sshll.u32 %s2251_s28, 6 }
  0x4e   : > { %s2814_s13 = scalar_select %p2454_p3, 1, 0 }
  0x4f   : > { %p2465_p12 = pnand %p1816_p4, %p52_p5  ;;  %s478_s3 = sand.u32 1, %s2251_s28  }
  0x50   : > { %2815 = sst [smem:[#allocation33_spill]] %s2814_s13  ;;  %s2474_s7 = scalar_lea.hbm %s2759_s1, %s2463_s19 }
  0x51   : > { %s2816_s22 = scalar_select %p2465_p12, 1, 0 }
  0x52   : > { %s482_s24 = scalar_lea.vmem [#allocation6], %s2460_s29  ;;  %s2477_s16 = scalar_lea.sflag [#allocation7], %s478_s3 }
  0x53   : > { %s489_s30 = sshll.u32 %s482_s24, 4  ;;  %s1979_s13 = scalar_lea.hbm %s2474_s7, 64  ;;  %s490_s30 = int_to_ptr.vmem [resolvable:$true] %s489_s30 }
  0x54   : > { %p1980_p4 = scmp.ne.s32.totalorder %s2474_s7, %s1979_s13  ;;  %p2483_p11 = pneg %p2465_p12 }
  0x55   : > { %s1984_s28 = scalar_lea.hbm %s2759_s1, 128  ;;  %p1985_p2 = scmp.lt.s32.totalorder %s2474_s7, %s2759_s1 }
  0x56   : > { %s2817_s25 = scalar_select %p2483_p11, 1, 0 }
  0x57   : > { %p1982_p13 = pnand %p2483_p11, %p1980_p4  ;;  %p1986_p5 = scmp.lt.s32.totalorder %s1984_s28, %s1979_s13 }
  0x59   : > { %p1983_p0 = pneg %p1982_p13  ;;  %p1987_p10 = por %p1986_p5, %p1985_p2 }
  0x5b   : > { %p1988_p1 = pnand %p1987_p10, %p1983_p0 }
  0x5d   : > { %1991 = shalt.err (!%p1988_p1)
}
  0x5e   : > { %s1992_s3 = scalar_lea.vmem %s490_s30, 64  ;;  %s2258_s12 = smov [#allocation6]  }
  0x5f   : > { %p1993_p3 = scmp.ne.s32.totalorder %s490_s30, %s1992_s3  ;;  %s1997_s11 = sshll.u32 %s2258_s12, 4  ;;  %s1998_s11 = int_to_ptr.vmem [resolvable:$false] %s1997_s11 }
  0x60   : > { %s1999_s9 = scalar_lea.vmem %s1998_s11, 128  ;;  %p2000_p4 = scmp.lt.s32.totalorder %s490_s30, %s1998_s11 }
  0x61   : > { %p1995_p9 = pnand %p1993_p3, %p2483_p11  ;;  %p2001_p13 = scmp.lt.s32.totalorder %s1999_s9, %s1992_s3 }
  0x63   : > { %p1996_p8 = pneg %p1995_p9  ;;  %p2002_p6 = por %p2001_p13, %p2000_p4 }
  0x65   : > { %p2003_p7 = pnand %p2002_p6, %p1996_p8 }
  0x67   : > { %2006 = shalt.err (!%p2003_p7)
}
  0x68   : > { %1801 = dma.hbm_to_vmem [thread:$0]  (!%p2465_p12), %s2474_s7, 64, %s490_s30, %s2477_s16  }
  0x69   : > { %s2259_s28 = smov [#allocation11]   ;;  %s2260_s13 = smov [#allocation14]  }
  0x6a   : > { %s381_s23 = sshll.u32 %s2259_s28, 4  ;;  %s405_s5 = sshll.u32 %s2260_s13, 4  ;;  %s382_s23 = int_to_ptr.vmem [resolvable:$true] %s381_s23  ;;  %s406_s5 = int_to_ptr.vmem [resolvable:$true] %s405_s5 }
  0x6b   : > { %s2018_s17 = scalar_lea.vmem %s382_s23, 16  ;;  %p2818_p3 = scmp.ne.s32.totalorder %s2805_s21, 0 }
  0x6c   : > { %p2019_p1 = scmp.ne.s32.totalorder %s382_s23, %s2018_s17  ;;  %s2025_s9 = scalar_lea.vmem %s382_s23, 32 }
  0x6d   : > { %p2026_p2 = scmp.lt.s32.totalorder %s382_s23, %s382_s23  ;;  %p2027_p6 = scmp.lt.s32.totalorder %s2025_s9, %s2018_s17 }
  0x6e   : > { %p2021_p9 = pnand %p2019_p1, %p2818_p3 }
  0x6f   : > { %p2028_p7 = por %p2027_p6, %p2026_p2 }
  0x70   : > { %p2022_p0 = pneg %p2021_p9 }
  0x72   : > { %p2029_p8 = pnand %p2028_p7, %p2022_p0 }
  0x74   : > { %2032 = shalt.err (!%p2029_p8)
}
  0x75   : > { %p2819_p5 = scmp.ne.s32.totalorder %s2804_s18, 0  ;;  %s2044_s12 = scalar_lea.vmem %s406_s5, 16 }
  0x76   : > { %p2045_p10 = scmp.ne.s32.totalorder %s406_s5, %s2044_s12  ;;  %s2051_s30 = scalar_lea.vmem %s406_s5, 32 }
  0x77   : > { %1779 = dma.hbm_to_vmem [thread:$0]  (!%p2819_p5), %s2762_s4, 16, %s382_s23, [#allocation10]  }
  0x78   : > { %p2047_p4 = pnand %p2045_p10, %p2818_p3  ;;  %p2052_p1 = scmp.lt.s32.totalorder %s406_s5, %s406_s5 }
  0x79   : > { %p2053_p9 = scmp.lt.s32.totalorder %s2051_s30, %s2044_s12 }
  0x7a   : > { %p2048_p13 = pneg %p2047_p4 }
  0x7b   : > { %p2054_p12 = por %p2053_p9, %p2052_p1 }
  0x7d   : > { %p2055_p2 = pnand %p2054_p12, %p2048_p13 }
  0x7f   : > { %2058 = shalt.err (!%p2055_p2)
}
  0x80   : > { %1785 = dma.hbm_to_vmem [thread:$0]  (!%p2819_p5), %s2764_s6, 16, %s406_s5, [#allocation13]  }
  0x81   : > { %s2261_s28 = smov [#allocation17]   ;;  %s2262_s13 = smov [#allocation18]  }
  0x82   : > { %s429_s23 = sshll.u32 %s2261_s28, 4  ;;  %s443_s17 = sshll.u32 %s2262_s13, 4  ;;  %s430_s23 = int_to_ptr.vmem [resolvable:$true] %s429_s23  ;;  %s444_s17 = int_to_ptr.vmem [resolvable:$true] %s443_s17 }
  0x83   : > { %s2070_s9 = scalar_lea.vmem %s430_s23, 16  ;;  %s2077_s11 = scalar_lea.vmem %s430_s23, 32 }
  0x84   : > { %p2071_p0 = scmp.ne.s32.totalorder %s430_s23, %s2070_s9  ;;  %p2078_p12 = scmp.lt.s32.totalorder %s430_s23, %s430_s23 }
  0x85   : > { %p2079_p8 = scmp.lt.s32.totalorder %s2077_s11, %s2070_s9 }
  0x86   : > { %p2073_p6 = pnand %p2071_p0, %p2818_p3 }
  0x87   : > { %p2080_p10 = por %p2079_p8, %p2078_p12 }
  0x88   : > { %p2074_p7 = pneg %p2073_p6 }
  0x8a   : > { %p2081_p4 = pnand %p2080_p10, %p2074_p7 }
  0x8c   : > { %2084 = shalt.err (!%p2081_p4)
}
  0x8d   : > { %1791 = dma.hbm_to_vmem [thread:$0]  (!%p2819_p5), %s2766_s8, 16, %s430_s23, [#allocation16]  }
  0x8e   : > { %s2096_s12 = scalar_lea.vmem %s444_s17, 64  ;;  %p2104_p2 = scmp.lt.s32.totalorder %s444_s17, %s444_s17 }
  0x8f   : > { %p2097_p13 = scmp.ne.s32.totalorder %s444_s17, %s2096_s12  ;;  %p2105_p0 = scmp.lt.s32.totalorder %s2096_s12, %s2096_s12 }
  0x91   : > { %p2099_p1 = pnand %p2097_p13, %p2818_p3  ;;  %p2106_p6 = por %p2105_p0, %p2104_p2 }
  0x93   : > { %p2100_p9 = pneg %p2099_p1 }
  0x95   : > { %p2107_p11 = pnand %p2106_p6, %p2100_p9 }
  0x97   : > { %2110 = shalt.err (!%p2107_p11)
}
  0x98   : > { %1794 = dma.hbm_to_vmem [thread:$0]  (!%p2819_p5), %s2768_s10, 64, %s444_s17, [#allocation19]  }
  0x99   : > { %s2534_s28 = scalar_lea.hbm %s2758_s0, %s2463_s19  ;;  %s464_s23 = scalar_lea.vmem [#allocation3], %s2460_s29 }
  0x9a   : > { %s471_s13 = sshll.u32 %s464_s23, 4  ;;  %s2541_s11 = scalar_lea.hbm %s2760_s2, %s2463_s19  ;;  %s472_s13 = int_to_ptr.vmem [resolvable:$true] %s471_s13 }
  0x9b   : > { %s2820_s7 = sand.u32 1, %s2247_s27   ;;  %s2111_s12 = scalar_lea.hbm %s2534_s28, 64 }
  0x9c   : > { %s461_s5 = scalar_lea.sflag [#allocation4], %s2820_s7  ;;  %p2112_p11 = scmp.ne.s32.totalorder %s2534_s28, %s2111_s12 }
  0x9d   : > { %p2821_p3 = scmp.ne.s32.totalorder %s2817_s25, 0  ;;  %s2116_s24 = scalar_lea.hbm %s2758_s0, 128 }
  0x9e   : > { %p2117_p12 = scmp.lt.s32.totalorder %s2534_s28, %s2758_s0  ;;  %p2118_p8 = scmp.lt.s32.totalorder %s2116_s24, %s2111_s12 }
  0x9f   : > { %p2114_p5 = pnand %p2112_p11, %p2821_p3 }
  0xa0   : > { %p2119_p10 = por %p2118_p8, %p2117_p12 }
  0xa1   : > { %p2115_p7 = pneg %p2114_p5 }
  0xa3   : > { %p2120_p4 = pnand %p2119_p10, %p2115_p7 }
  0xa5   : > { %2123 = shalt.err (!%p2120_p4)
}
  0xa6   : > { %s2124_s19 = scalar_lea.vmem %s472_s13, 64  ;;  %s2263_s23 = smov [#allocation3]  }
  0xa7   : > { %p2125_p13 = scmp.ne.s32.totalorder %s472_s13, %s2124_s19  ;;  %s2129_s18 = sshll.u32 %s2263_s23, 4  ;;  %s2130_s18 = int_to_ptr.vmem [resolvable:$false] %s2129_s18 }
  0xa8   : > { %s2131_s9 = scalar_lea.vmem %s2130_s18, 128  ;;  %p2132_p2 = scmp.lt.s32.totalorder %s472_s13, %s2130_s18 }
  0xa9   : > { %p2127_p1 = pnand %p2125_p13, %p2821_p3  ;;  %p2133_p0 = scmp.lt.s32.totalorder %s2131_s9, %s2124_s19 }
  0xab   : > { %p2128_p9 = pneg %p2127_p1  ;;  %p2134_p6 = por %p2133_p0, %p2132_p2 }
  0xad   : > { %p2135_p11 = pnand %p2134_p6, %p2128_p9 }
  0xaf   : > { %2138 = shalt.err (!%p2135_p11)
}
  0xb0   : > { %p2822_p5 = scmp.ne.s32.totalorder %s2816_s22, 0  ;;  %s500_s7 = scalar_lea.vmem [#allocation8], %s2460_s29 }
  0xb1   : > { %s507_s12 = sshll.u32 %s500_s7, 4  ;;  %s2139_s17 = scalar_lea.hbm %s2541_s11, 64  ;;  %s508_s12 = int_to_ptr.vmem [resolvable:$true] %s507_s12 }
  0xb2   : > { %1798 = dma.hbm_to_vmem [thread:$0]  (!%p2822_p5), %s2534_s28, 64, %s472_s13, %s461_s5  }
  0xb3   : > { %p2140_p7 = scmp.ne.s32.totalorder %s2541_s11, %s2139_s17  ;;  %s2144_s3 = scalar_lea.hbm %s2760_s2, 128 }
  0xb4   : > { %p2145_p10 = scmp.lt.s32.totalorder %s2541_s11, %s2760_s2  ;;  %p2146_p4 = scmp.lt.s32.totalorder %s2144_s3, %s2139_s17 }
  0xb5   : > { %p2142_p12 = pnand %p2140_p7, %p2821_p3 }
  0xb6   : > { %p2147_p13 = por %p2146_p4, %p2145_p10 }
  0xb7   : > { %p2143_p8 = pneg %p2142_p12 }
  0xb9   : > { %p2148_p1 = pnand %p2147_p13, %p2143_p8 }
  0xbb   : > { %2151 = shalt.err (!%p2148_p1)
}
  0xbc   : > { %s2152_s29 = scalar_lea.vmem %s508_s12, 64  ;;  %s2264_s28 = smov [#allocation8]  }
  0xbd   : > { %p2153_p9 = scmp.ne.s32.totalorder %s508_s12, %s2152_s29  ;;  %s2157_s13 = sshll.u32 %s2264_s28, 4  ;;  %s2158_s13 = int_to_ptr.vmem [resolvable:$false] %s2157_s13 }
  0xbe   : > { %s2159_s5 = scalar_lea.vmem %s2158_s13, 128  ;;  %p2160_p6 = scmp.lt.s32.totalorder %s508_s12, %s2158_s13 }
  0xbf   : > { %p2155_p2 = pnand %p2153_p9, %p2821_p3  ;;  %p2161_p11 = scmp.lt.s32.totalorder %s2159_s5, %s2152_s29 }
  0xc1   : > { %p2156_p0 = pneg %p2155_p2  ;;  %p2162_p7 = por %p2161_p11, %p2160_p6 }
  0xc3   : > { %p2163_p12 = pnand %p2162_p7, %p2156_p0 }
  0xc5   : > { %2166 = shalt.err (!%p2163_p12)
}
  0xc6   : > { %1804 = dma.hbm_to_vmem [thread:$0]  (!%p2822_p5), %s2541_s11, 64, %s508_s12, %s2477_s16  }
  0xc7   : > { %p2823_p8 = scmp.ne.s32.totalorder %s2803_s15, 0 }
  0xc8   : > { %s2582_s25 = sand.u32 (!%p2823_p8), 1, %s2243_s26   ;;  %p2824_p3 = scmp.ne.s32.totalorder (!%p2823_p8), %s2811_s20, 0 }
  0xc9   : > { %516 = sbr.rel (%p2823_p8) target bundleno = 1760 (0x6e0), region = 72  ;;  %s2585_s23 = sshll.u32 (!%p2823_p8), %s2582_s25, 2 }
  0xca   : > { %s519_s18 = scalar_lea.sflag (!%p2823_p8), [#allocation4], %s2582_s25  ;;  %s522_s9 = scalar_lea.vmem (!%p2823_p8), [#allocation3], %s2585_s23 }
  0xce   : > { %2210 = dma.done.wait (%p2824_p3), %s519_s18, 64  }
  0xcf   : > { %2212 = vsyncadd (%p2824_p3), %s519_s18, 4294967232  ;;  %s527_s15 = sand.u32 1, %s2367_s14   ;;  %s531_s22 = scalar_lea.vmem [#allocation6], %s2585_s23 }
  0xd0   : > { %s528_s16 = scalar_lea.sflag [#allocation7], %s527_s15 }
  0xd1   : > { %2214 = dma.done.wait (%p2824_p3), %s528_s16, 128  }
  0xd2   : > { %2216 = vsyncadd (%p2824_p3), %s528_s16, 4294967168  ;;  %s540_s11 = scalar_lea.vmem [#allocation8], %s2585_s23  ;;  %p2825_p5 = scmp.eq.s32.totalorder %s2367_s14, 0 }
  0xd4   : > { %2218 = dma.done.wait (%p2825_p5), [#allocation10], 272   ;;  %p2826_p10 = pmov %p2825_p5 }
  0xd5   : > { %p2827_p4 = pmov %p2825_p5 }
  0xd6   : > { %2220 = vsyncadd (%p2826_p10), [#allocation10], 4294967024 }
  0xd7   : > { %2222 = dma.done.wait (%p2827_p4), [#allocation13], 272   ;;  %p2828_p13 = pmov %p2827_p4 }
  0xd8   : > { %p2829_p1 = pmov %p2827_p4 }
  0xd9   : > { %2224 = vsyncadd (%p2828_p13), [#allocation13], 4294967024 }
  0xda   : > { %2226 = dma.done.wait (%p2829_p1), [#allocation16], 272   ;;  %p2830_p9 = pmov %p2829_p1 }
  0xdb   : > { %p2831_p2 = pmov %p2829_p1 }
  0xdc   : > { %2228 = vsyncadd (%p2830_p9), [#allocation16], 4294967024 }
  0xdd   : > { %2230 = dma.done.wait (%p2831_p2), [#allocation19], 64   ;;  %p2832_p0 = pmov %p2829_p1 }
  0xde   : > { %v2265_v0 = vmov 0.0   ;;  %vm2266_vm0 = vmmov 0   ;;  %v1876_v1 = vld [vmem:[#allocation9 + $0x8] sm:$0xff]   ;;  %v1877_v2 = vld [vmem:[#allocation12 + $0x8] sm:$0xff]   ;;  %v1879_v4 = vld [vmem:[#allocation12] sm:$0xff]   ;;  %vm650_vm1 = vcmask 261120  }
  0xdf   : > { %2232 = vsyncadd (%p2832_p0), [#allocation19], 4294967232  ;;  %1657 = vmatprep.subr.bf16.mxu0 %v2265_v0  ;;  %1665 = vmatprep.subr.bf16.mxu1 %v2265_v0  ;;  %v1878_v3 = vld [vmem:[#allocation9] sm:$0xff]   ;;  %v622_v5 = vld [vmem:[%s522_s9] sm:$0xf]  ;;  %s2267_s20 = smov 32  }
  0xe0   : > { %1661 = vmatprep.mubr.msk.bf16.mxu0 %vm2266_vm0, %v2265_v0  ;;  %1669 = vmatprep.mubr.msk.bf16.mxu1 %vm2266_vm0, %v2265_v0  ;;  %v623_v6 = vld [vmem:[%s531_s22] sm:$0xf]  ;;  %v1604_v9 = vld [vmem:[#allocation14] ss:$0 sm:$0xff]  ;;  %s2268_s7 = smov 96   ;;  %s2833_s30 = sld [smem:[#allocation37_spill]] }
  0xe1   : > { %1658 = vmatpush3.bf16.msra.mxu0 %v1876_v1  ;;  %1666 = vmatpush3.bf16.msra.mxu1 %v1877_v2  ;;  %v1880_v7 = vld [vmem:[#allocation18] ss:$0 sps:$4 sm:$0xff]   ;;  %v1600_v8 = vld [vmem:[#allocation11] ss:$0 sm:$0xff]  ;;  %vm849_vm2 = vcmask 64512   ;;  %s2269_s24 = smov 120  }
  0xe2   : > { %1659 = vmatprep.subr.bf16.mxu0 %v2265_v0  ;;  %1667 = vmatprep.subr.bf16.mxu1 %v2265_v0  ;;  %s2270_s3 = smov 112   ;;  %s2271_s21 = smov 104   ;;  %v1881_v33 = vld [vmem:[#allocation15 + $0x8] sm:$0xff]   ;;  %v1882_v34 = vld [vmem:[#allocation15] sm:$0xff]   ;;  %v624_v35 = vld [vmem:[%s540_s11] sm:$0xf] }
  0xe3   : > { %831 = vrot.lane.b32.xlu0 %v1880_v7, %s2267_s20  ;;  %vm911_vm3 = vcmask 1043456   ;;  %s2272_s19 = smov 8   ;;  %s2273_s29 = smov 16   ;;  %vm1073_vm4 = vcmask 130112   ;;  %vm1189_vm5 = vcmask 195712   ;;  %vm1305_vm6 = vcmask 261312  }
  0xe4   : > { %s2834_s5 = sld [smem:[#allocation38_spill]]  ;;  %s2274_s15 = smov 24   ;;  %vm1376_vm7 = vcmask 257024  }
  0xe5   : > { %1660 = vmatpush3.bf16.msra.mxu0 %v1878_v3  ;;  %1668 = vmatpush3.bf16.msra.mxu1 %v1879_v4  ;;  %s2835_s11 = sld [smem:[#allocation39_spill]]  ;;  %s620_s12 = scalar_lea.vmem [#allocation20], %s2585_s23 }
  0xe6   : > { %1681 = vmatprep.subr.bf16.mxu1 %v2265_v0  ;;  %1673 = vmatprep.subr.bf16.mxu0 %v2265_v0  ;;  %v625_v25 = vld [vmem:[%s2833_s30] sm:$0xf]  ;;  %s2836_s20 = sld [smem:[#allocation32_spill]]  ;;  %s1392_s17 = sshll.u32 %s620_s12, 4  ;;  %s2717_s17 = int_to_ptr.vmem [resolvable:$true] %s1392_s17 }
  0xe7   : > { %s2167_s23 = scalar_lea.vmem %s2717_s17, 64 }
  0xe8   : > { %1662 = vmatmul.mubr.msk.bf16.vlgmr.msra.gmra.mxu0 %vm650_vm1, %v622_v5  ;;  %1670 = vmatmul.mubr.msk.bf16.vlgmr.msra.gmra.mxu1 %vm650_vm1, %v623_v6  ;;  %p2168_p6 = scmp.ne.s32.totalorder %s2717_s17, %s2167_s23 }
  0xe9   : > { %1677 = vmatprep.mubr.msk.bf16.mxu0 %vm2266_vm0, %v2265_v0  ;;  %1683 = vmatprep.mubr.msk.bf16.mxu1 %vm2266_vm0, %v2265_v0 }
  0xea   : > { %1674 = vmatpush3.bf16.msra.mxu0 %v1881_v33 }
  0xeb   : > { %1675 = vmatprep.subr.bf16.mxu0 %v2265_v0 }
  0xec   : > { %p2838_p11 = scmp.ne.s32.totalorder %s2836_s20, 0 }
  0xee   : > { %1676 = vmatpush3.bf16.msra.mxu0 %v1882_v34  ;;  %p2169_p7 = pnand %p2168_p6, %p2838_p11 }
  0xef   : > { %1687 = vmatprep.subr.bf16.mxu0 %v2265_v0 }
  0xf0   : > { %p2170_p12 = pneg %p2169_p7 }
  0xf1   : > { %1678 = vmatmul.mubr.msk.bf16.vlgmr.msra.gmra.mxu0 %vm650_vm1, %v624_v35 }
  0xf2   : > { %1689 = vmatprep.mubr.msk.bf16.mxu0 %vm2266_vm0, %v2265_v0 }
 0x155   : > { %v832_v14 = vpop.permute.xlu0 %831 }
 0x1a8   : > { %v688_v10 = vpop.f32.mrf.mxu0  ;;  %v754_v12 = vpop.f32.mrf.mxu1 }
 0x1a9   : > { %v689_v11 = vadd.f32 %v1600_v8, %v688_v10  ;;  %v755_v13 = vadd.f32 %v1604_v9, %v754_v12  ;;  %v1608_v8 = vld [vmem:[#allocation17] ss:$0 sm:$0xff] }
 0x1aa   : > { %v1663_v15 = vpop.f32.mrf.mxu0  ;;  %v1671_v17 = vpop.f32.mrf.mxu1 }
 0x1ab   : > { %v826_v16 = vpack.c.bf16 %v689_v11, %v689_v11  ;;  %v840_v18 = vpack.c.bf16 %v755_v13, %v755_v13 }
 0x1ac   : > { %v691_v19 = vpop.f32.mrf.mxu0  ;;  %v757_v20 = vpop.f32.mrf.mxu1 }
 0x1ad   : > { %v834_v21 = vmul.bf16 %v832_v14, %v826_v16  ;;  %v842_v22 = vmul.bf16 %v840_v18, %v832_v14  ;;  %v827_v26 = vmul.bf16 %v826_v16, %v625_v25  ;;  %v841_v27 = vmul.bf16 %v840_v18, %v625_v25 }
 0x1ae   : > { %v1664_v23 = vpop.f32.mrf.mxu0  ;;  %v1672_v24 = vpop.f32.mrf.mxu1 }
 0x1af   : > { %836 = vrot.lane.b32.xlu1 %v834_v21, %s2268_s7  ;;  %844 = vrot.lane.b32.xlu0 %v842_v22, %s2268_s7  ;;  %s1626_s7 = sshll.u32 %s2367_s14, 6  ;;  %s1379_s14 = scalar_lea.sflag [#allocation5], %s2582_s25 }
 0x1b1   : > { %v820_v5 = vpop.f32.mrf.mxu0 }
 0x1b2   : > { %v821_v10 = vadd.f32 %v1608_v8, %v820_v5 }
 0x1b3   : > { %v1679_v6 = vpop.f32.mrf.mxu0 }
 0x1b4   : > { %v848_v13 = vpack.c.bf16 %v821_v10, %v821_v10 }
 0x1b5   : > { %v823_v7 = vpop.f32.mrf.mxu0 }
 0x1b6   : > { %v913_v14 = vsel %vm911_vm3, %v848_v13, 0 }
 0x1b7   : > { %v1680_v9 = vpop.f32.mrf.mxu0  ;;  %1688 = vmatpush3.bf16.msra.mxu0 %v913_v14 }
 0x1b8   : > { %1699 = vmatprep.subr.bf16.mxu0 %v2265_v0 }
 0x221   : > { %v837_v28 = vpop.permute.xlu1 %836  ;;  %v845_v29 = vpop.permute.xlu0 %844 }
 0x222   : > { %v839_v30 = vadd.bf16 %v837_v28, %v827_v26  ;;  %v847_v31 = vadd.bf16 %v845_v29, %v841_v27 }
 0x224   : > { %957 = vrot.lane.b32.xlu0 %v839_v30, %s2269_s24  ;;  %960 = vrot.lane.b32.xlu1 %v847_v31, %s2269_s24  ;;  %v854_v32 = vsel %vm849_vm2, %v847_v31, 0 }
 0x225   : > { %1682 = vmatpush3.bf16.xpose.msra.mxu1 %v854_v32 }
 0x226   : > { %1693 = vmatprep.subr.bf16.mxu1 %v2265_v0 }
 0x228   : > { %1075 = vrot.lane.b32.xlu0 %v839_v30, %s2270_s3  ;;  %1077 = vrot.lane.b32.xlu1 %v847_v31, %s2270_s3 }
 0x22c   : > { %1191 = vrot.lane.b32.xlu0 %v839_v30, %s2271_s21  ;;  %1193 = vrot.lane.b32.xlu1 %v847_v31, %s2271_s21 }
 0x22d   : > { %1684 = vmatmul.mubr.msk.bf16.vlgmr.msra.gmra.mxu1 %vm849_vm2, %v839_v30 }
 0x22e   : > { %1695 = vmatprep.mubr.msk.bf16.mxu1 %vm2266_vm0, %v2265_v0 }
 0x296   : > { %v961_v36 = vpop.permute.xlu1 %960  ;;  %v958_v39 = vpop.permute.xlu0 %957 }
 0x297   : > { %v966_v37 = vsel %vm849_vm2, %v961_v36, 0 }
 0x298   : > { %1694 = vmatpush3.bf16.xpose.msra.mxu1 %v966_v37 }
 0x299   : > { %1705 = vmatprep.subr.bf16.mxu1 %v2265_v0 }
 0x29a   : > { %v1078_v38 = vpop.permute.xlu1 %1077  ;;  %v1076_v42 = vpop.permute.xlu0 %1075 }
 0x29b   : > { %v1083_v40 = vsel %vm849_vm2, %v1078_v38, 0 }
 0x29e   : > { %v1194_v41 = vpop.permute.xlu1 %1193  ;;  %v1192_v44 = vpop.permute.xlu0 %1191 }
 0x29f   : > { %1696 = vmatmul.mubr.msk.bf16.vlgmr.msra.gmra.mxu1 %vm849_vm2, %v958_v39  ;;  %v1199_v43 = vsel %vm849_vm2, %v1194_v41, 0 }
 0x2a0   : > { %1706 = vmatpush3.bf16.xpose.msra.mxu1 %v1083_v40  ;;  %1707 = vmatprep.mubr.msk.bf16.mxu1 %vm2266_vm0, %v2265_v0 }
 0x2a1   : > { %1717 = vmatprep.subr.bf16.mxu1 %v2265_v0 }
 0x2a7   : > { %1708 = vmatmul.mubr.msk.bf16.vlgmr.msra.gmra.mxu1 %vm849_vm2, %v1076_v42 }
 0x2a8   : > { %1718 = vmatpush3.bf16.xpose.msra.mxu1 %v1199_v43  ;;  %1719 = vmatprep.mubr.msk.bf16.mxu1 %vm2266_vm0, %v2265_v0 }
 0x2a9   : > { %1729 = vmatprep.subr.bf16.mxu1 %v2265_v0 }
 0x2af   : > { %1720 = vmatmul.mubr.msk.bf16.vlgmr.msra.gmra.mxu1 %vm849_vm2, %v1192_v44 }
 0x2b0   : > { %1733 = vmatprep.mubr.msk.bf16.mxu1 %vm2266_vm0, %v2265_v0 }
 0x2ed   : > { %v890_v45 = vpop.f32.mrf.mxu1 }
 0x2ee   : > { %v896_v46 = vsel %vm849_vm2, %v890_v45, -inf }
 0x2ef   : > { %897 = vmax.xlane.f32.xlu1 %v896_v46  ;;  %v1685_v47 = vpop.f32.mrf.mxu1 }
 0x2f1   : > { %v893_v48 = vpop.f32.mrf.mxu1 }
 0x2f3   : > { %v1686_v49 = vpop.f32.mrf.mxu1 }
 0x35f   : > { %v1002_v50 = vpop.f32.mrf.mxu1 }
 0x360   : > { %v1008_v51 = vsel %vm849_vm2, %v1002_v50, -inf }
 0x361   : > { %1009 = vmax.xlane.f32.xlu0 %v1008_v51  ;;  %v1697_v52 = vpop.f32.mrf.mxu1 }
 0x363   : > { %v1005_v53 = vpop.f32.mrf.mxu1 }
 0x365   : > { %v1698_v54 = vpop.f32.mrf.mxu1 }
 0x367   : > { %v1119_v55 = vpop.f32.mrf.mxu1 }
 0x368   : > { %v1125_v56 = vsel %vm849_vm2, %v1119_v55, -inf }
 0x369   : > { %1126 = vmax.xlane.f32.xlu0 %v1125_v56  ;;  %v1709_v57 = vpop.f32.mrf.mxu1 }
 0x36b   : > { %v1122_v58 = vpop.f32.mrf.mxu1 }
 0x36d   : > { %v1710_v59 = vpop.f32.mrf.mxu1 }
 0x36f   : > { %v1235_v60 = vpop.f32.mrf.mxu1 }
 0x370   : > { %v1241_v61 = vsel %vm849_vm2, %v1235_v60, -inf }
 0x371   : > { %1242 = vmax.xlane.f32.xlu1 %v1241_v61  ;;  %v1721_v62 = vpop.f32.mrf.mxu1 }
 0x373   : > { %v1238_v63 = vpop.f32.mrf.mxu1 }
 0x375   : > { %v1722_v1 = vpop.f32.mrf.mxu1 }
 0x376   : > { %v1883_v1 = vld [vmem:[%s2834_s5 + $0x8] sm:$0xff]  }
 0x377   : > { %1730 = vmatpush3.bf16.msra.mxu1 %v1883_v1 }
 0x378   : > { %v898_v2 = vpop.xlane.xlu1 %897  ;;  %1731 = vmatprep.subr.bf16.mxu1 %v2265_v0 }
 0x379   : > { %v899_v3 = vsub.f32 %v890_v45, %v898_v2  ;;  %v1884_v2 = vld [vmem:[%s2834_s5] sm:$0xff]  }
 0x37b   : > { %v900_v4 = vmul.f32 1.442695, %v899_v3  ;;  %1732 = vmatpush3.bf16.msra.mxu1 %v1884_v2 }
 0x37d   : > { %1885 = vpow2.f32 %v900_v4 }
 0x38a   : > { %v1886_v11 = vpop.eup %1885 }
 0x38b   : > { %v902_v12 = vsel %vm849_vm2, %v1886_v11, 0.0 }
 0x38c   : > { %903 = vadd.xlane.f32.xlu0 %v902_v12 }
 0x3ea   : > { %v1010_v15 = vpop.xlane.xlu0 %1009 }
 0x3eb   : > { %v1011_v16 = vsub.f32 %v1002_v50, %v1010_v15 }
 0x3ed   : > { %v1012_v17 = vmul.f32 1.442695, %v1011_v16 }
 0x3ef   : > { %1887 = vpow2.f32 %v1012_v17 }
 0x3f2   : > { %v1127_v18 = vpop.xlane.xlu0 %1126 }
 0x3f3   : > { %v1128_v19 = vsub.f32 %v1119_v55, %v1127_v18 }
 0x3f5   : > { %v1129_v20 = vmul.f32 1.442695, %v1128_v19 }
 0x3f7   : > { %1889 = vpow2.f32 %v1129_v20 }
 0x3fa   : > { %v1243_v26 = vpop.xlane.xlu1 %1242 }
 0x3fb   : > { %v1244_v27 = vsub.f32 %v1235_v60, %v1243_v26 }
 0x3fc   : > { %v1888_v21 = vpop.eup %1887 }
 0x3fd   : > { %v1014_v22 = vsel %vm849_vm2, %v1888_v21, 0.0  ;;  %v1245_v28 = vmul.f32 1.442695, %v1244_v27 }
 0x3fe   : > { %1015 = vadd.xlane.f32.xlu1 %v1014_v22 }
 0x404   : > { %v1890_v23 = vpop.eup %1889 }
 0x405   : > { %v1131_v24 = vsel %vm849_vm2, %v1890_v23, 0.0 }
 0x406   : > { %1132 = vadd.xlane.f32.xlu0 %v1131_v24 }
 0x40f   : > { %1137 = vrot.lane.b32.xlu1 %v848_v13, %s2270_s3  ;;  %s2837_s3 = sld [smem:[#allocation40_spill]] }
 0x415   : > { %v904_v25 = vpop.xlane.xlu0 %903 }
 0x416   : > { %1891 = vrcp.f32 %v904_v25 }
 0x417   : > { %1893 = vpow2.f32 %v1245_v28 }
 0x41c   : > { %1021 = vrot.lane.b32.xlu0 %v848_v13, %s2269_s24 }
 0x423   : > { %v1892_v29 = vpop.eup %1891 }
 0x424   : > { %v906_v30 = vmul.f32 %v1892_v29, %v1886_v11  ;;  %v1894_v32 = vpop.eup %1893  ;;  %v1621_v11 = vld [vmem:[%s2835_s11] ss:$0 sm:$0xff] }
 0x425   : > { %v1247_v33 = vsel %vm849_vm2, %v1894_v32, 0.0 }
 0x426   : > { %v907_v31 = vpack.c.bf16 %v906_v30, %v906_v30 }
 0x428   : > { %1690 = vmatmul.mubr.msk.bf16.vlgmr.msra.gmra.mxu0 %vm849_vm2, %v907_v31 }
 0x429   : > { %1701 = vmatprep.mubr.msk.bf16.mxu0 %vm2266_vm0, %v2265_v0 }
 0x433   : > { %1248 = vadd.xlane.f32.xlu1 %v1247_v33 }
 0x444   : > { %1253 = vrot.lane.b32.xlu1 %v848_v13, %s2271_s21  ;;  %s2715_s21 = scalar_lea.hbm %s2837_s3, %s1626_s7 }
 0x487   : > { %v1016_v34 = vpop.xlane.xlu1 %1015 }
 0x488   : > { %1895 = vrcp.f32 %v1016_v34 }
 0x48b   : > { %v1138_v40 = vpop.permute.xlu1 %1137 }
 0x48c   : > { %v1143_v42 = vsel %vm911_vm3, %v1138_v40, 0 }
 0x48f   : > { %v1133_v35 = vpop.xlane.xlu0 %1132 }
 0x490   : > { %1897 = vrcp.f32 %v1133_v35 }
 0x493   : > { %v1022_v36 = vpop.permute.xlu0 %1021 }
 0x494   : > { %v1027_v37 = vsel %vm911_vm3, %v1022_v36, 0 }
 0x495   : > { %v1896_v38 = vpop.eup %1895  ;;  %1700 = vmatpush3.bf16.msra.mxu0 %v1027_v37 }
 0x496   : > { %1711 = vmatprep.subr.bf16.mxu0 %v2265_v0  ;;  %v1018_v39 = vmul.f32 %v1896_v38, %v1888_v21 }
 0x498   : > { %v1019_v41 = vpack.c.bf16 %v1018_v39, %v1018_v39 }
 0x49a   : > { %1702 = vmatmul.mubr.msk.bf16.vlgmr.msra.gmra.mxu0 %vm849_vm2, %v1019_v41 }
 0x49b   : > { %1712 = vmatpush3.bf16.msra.mxu0 %v1143_v42  ;;  %1713 = vmatprep.mubr.msk.bf16.mxu0 %vm2266_vm0, %v2265_v0 }
 0x49c   : > { %1723 = vmatprep.subr.bf16.mxu0 %v2265_v0 }
 0x49d   : > { %v1898_v43 = vpop.eup %1897 }
 0x49e   : > { %v1135_v44 = vmul.f32 %v1898_v43, %v1890_v23 }
 0x4a0   : > { %v1136_v45 = vpack.c.bf16 %v1135_v44, %v1135_v44 }
 0x4a2   : > { %1714 = vmatmul.mubr.msk.bf16.vlgmr.msra.gmra.mxu0 %vm849_vm2, %v1136_v45 }
 0x4a3   : > { %1725 = vmatprep.mubr.msk.bf16.mxu0 %vm2266_vm0, %v2265_v0 }
 0x4bc   : > { %v1249_v46 = vpop.xlane.xlu1 %1248 }
 0x4bd   : > { %1899 = vrcp.f32 %v1249_v46 }
 0x4c0   : > { %v1254_v47 = vpop.permute.xlu1 %1253 }
 0x4c1   : > { %v1259_v48 = vsel %vm911_vm3, %v1254_v47, 0 }
 0x4c2   : > { %1724 = vmatpush3.bf16.msra.mxu0 %v1259_v48 }
 0x4ca   : > { %v1900_v49 = vpop.eup %1899 }
 0x4cb   : > { %v1251_v50 = vmul.f32 %v1900_v49, %v1894_v32 }
 0x4cd   : > { %v1252_v51 = vpack.c.bf16 %v1251_v50, %v1251_v50 }
 0x4cf   : > { %1726 = vmatmul.mubr.msk.bf16.vlgmr.msra.gmra.mxu0 %vm849_vm2, %v1252_v51 }
 0x4e8   : > { %v949_v52 = vpop.f32.mrf.mxu0 }
 0x4e9   : > { %955 = vst.msk [vmem:[#allocation2] sm:$0xff] %vm849_vm2, %v949_v52 }
 0x4ea   : > { %v1691_v53 = vpop.f32.mrf.mxu0 }
 0x4ec   : > { %v952_v54 = vpop.f32.mrf.mxu0 }
 0x4ee   : > { %v1692_v55 = vpop.f32.mrf.mxu0 }
 0x55a   : > { %v1063_v56 = vpop.f32.mrf.mxu0 }
 0x55b   : > { %1070 = vrot.lane.b32.xlu0 %v1063_v56, %s2272_s19  ;;  %s2275_s19 = smov [#allocation20]  }
 0x55c   : > { %v1703_v57 = vpop.f32.mrf.mxu0 }
 0x55e   : > { %v1066_v58 = vpop.f32.mrf.mxu0 }
 0x560   : > { %v1704_v59 = vpop.f32.mrf.mxu0 }
 0x562   : > { %v1179_v60 = vpop.f32.mrf.mxu0 }
 0x563   : > { %1186 = vrot.lane.b32.xlu1 %v1179_v60, %s2273_s29  ;;  %s2171_s29 = sshll.u32 %s2275_s19, 4  ;;  %s2172_s29 = int_to_ptr.vmem [resolvable:$false] %s2171_s29 }
 0x564   : > { %v1715_v61 = vpop.f32.mrf.mxu0  ;;  %s2173_s28 = scalar_lea.vmem %s2172_s29, 128  ;;  %p2174_p8 = scmp.lt.s32.totalorder %s2717_s17, %s2172_s29 }
 0x565   : > { %p2175_p3 = scmp.lt.s32.totalorder %s2173_s28, %s2167_s23 }
 0x566   : > { %v1182_v62 = vpop.f32.mrf.mxu0 }
 0x567   : > { %p2176_p5 = por %p2175_p3, %p2174_p8 }
 0x568   : > { %v1716_v63 = vpop.f32.mrf.mxu0 }
 0x569   : > { %p2177_p10 = pnand %p2176_p5, %p2170_p12 }
 0x58f   : > { %v1295_v3 = vpop.f32.mrf.mxu0 }
 0x590   : > { %1302 = vrot.lane.b32.xlu0 %v1295_v3, %s2274_s15 }
 0x591   : > { %v1727_v4 = vpop.f32.mrf.mxu0 }
 0x593   : > { %v1298_v5 = vpop.f32.mrf.mxu0 }
 0x595   : > { %v1728_v6 = vpop.f32.mrf.mxu0 }
 0x5cd   : > { %v1071_v7 = vpop.permute.xlu0 %1070 }
 0x5ce   : > { %1074 = vst.msk [vmem:[#allocation2] sm:$0xff] %vm1073_vm4, %v1071_v7 }
 0x5d5   : > { %v1187_v8 = vpop.permute.xlu1 %1186 }
 0x5d6   : > { %1190 = vst.msk [vmem:[#allocation2] sm:$0xff] %vm1189_vm5, %v1187_v8 }
 0x602   : > { %v1303_v9 = vpop.permute.xlu0 %1302 }
 0x603   : > { %1306 = vst.msk [vmem:[#allocation2] sm:$0xff] %vm1305_vm6, %v1303_v9 }
 0x60a   : > { %v1307_v10 = vld [vmem:[#allocation2] sm:$0xff] }
 0x60b   : > { %v1308_v0 = vpack.c.bf16 %v1307_v10, %v1307_v10 }
 0x60d   : > { %1734 = vmatmul.mubr.msk.bf16.vlgmr.msra.gmra.mxu1 %vm650_vm1, %v1308_v0 }
 0x6cd   : > { %v1369_v12 = vpop.f32.mrf.mxu1 }
 0x6ce   : > { %v1370_v13 = vadd.f32 %v1621_v11, %v1369_v12 }
 0x6cf   : > { %v1735_v14 = vpop.f32.mrf.mxu1 }
 0x6d0   : > { %v1375_v15 = vpack.c.bf16 %v1370_v13, %v1370_v13 }
 0x6d1   : > { %v1372_v16 = vpop.f32.mrf.mxu1 }
 0x6d2   : > { %1377 = vst.msk [vmem:[%s620_s12] sm:$0xf] %vm1376_vm7, %v1375_v15 }
 0x6d3   : > { %v1736_v17 = vpop.f32.mrf.mxu1 }
 0x6d4   : > { %2180 = shalt.err (!%p2177_p10)
}
 0x6d5   : > { %s2181_s13 = scalar_lea.hbm %s2715_s21, 64  ;;  %s2185_s9 = scalar_lea.hbm %s2837_s3, 128 }
 0x6d6   : > { %p2182_p4 = scmp.ne.s32.totalorder %s2715_s21, %s2181_s13  ;;  %p2186_p9 = scmp.lt.s32.totalorder %s2715_s21, %s2837_s3 }
 0x6d7   : > { %p2187_p2 = scmp.lt.s32.totalorder %s2185_s9, %s2181_s13 }
 0x6d8   : > { %p2183_p13 = pnand %p2182_p4, %p2838_p11 }
 0x6d9   : > { %p2188_p0 = por %p2187_p2, %p2186_p9 }
 0x6da   : > { %p2184_p1 = pneg %p2183_p13 }
 0x6dc   : > { %p2189_p6 = pnand %p2188_p0, %p2184_p1 }
 0x6de   : > { %2192 = shalt.err (!%p2189_p6)
}
 0x6df   : > { %1771 = dma.vmem_to_hbm [thread:$0]  (%p2838_p11), %s2717_s17, 64, %s2715_s21, %s1379_s14  }
 0x6e0 PF: > { %s2839_s22 = sld [smem:[#allocation28_spill]] }
 0x6e1   : > { %s2840_s11 = sld [smem:[#allocation33_spill]] }
 0x6e2   : > { %s2841_s7 = sld [smem:[#allocation29_spill]] }
 0x6e6   : > { %s1404_s12 = sand.u32 1, %s2839_s22  }
 0x6e7   : > { %p2842_p7 = scmp.ne.s32.totalorder %s2840_s11, 0  ;;  %s1405_s30 = scalar_lea.sflag [#allocation5], %s1404_s12 }
 0x6e8   : > { %p2843_p12 = scmp.ge.s32.totalorder %s2841_s7, 2 }
 0x6ea   : > { %p1806_p8 = pnand %p2843_p12, %p2842_p7 }
 0x6ec   : > { %p1807_p3 = pneg %p1806_p8 }
 0x6ee   : > { %2234 = dma.done.wait (%p1807_p3), %s1405_s30, 64  }
 0x6ef   : > { %2236 = vsyncadd (%p1807_p3), %s1405_s30, 4294967232  ;;  %s2844_s28 = sld [smem:[#allocation30_spill]]  ;;  %s2846_s25 = smov %s2243_s26 }
 0x6f0   : > { %s2845_s24 = sld [smem:[#allocation31_spill]]  ;;  %s2847_s26 = smov %s2247_s27 }
 0x6f5   : > { %p33_p5 = scmp.ge.s32.totalorder %s2844_s28, 4  }
 0x6f6   : > { %s2848_s27 = smov %s2845_s24 }
 0x6f7   :  { %35 = sbr.rel (!%p33_p5) target bundleno = 19 (0x13), region = 169 }
 0x6fc   :  { %1410 = vsyncpa [#allocation4], 1 }
 0x6fd   :  { %1412 = vsyncpa [#allocation4 + $0x1], 1 }
 0x6fe   :  { %1413 = vsyncpa [#allocation7], 1 }
 0x6ff   :  { %1415 = vsyncpa [#allocation7 + $0x1], 1 }
 0x700   :  { %1416 = vsyncpa [#allocation10], 1 }
 0x701   :  { %1417 = vsyncpa [#allocation13], 1 }
 0x702   :  { %1418 = vsyncpa [#allocation16], 1 }
 0x703   :  { %1419 = vsyncpa [#allocation19], 1 }
 0x704   :  { %1420 = vsyncpa [#allocation5], 1 }
 0x705   :  { %1422 = vsyncpa [#allocation5 + $0x1], 1 }

</bundles_post_ra>
